<compile_context>
chip_gen: v6e
topology: v6e:2x2x1
jax: 0.10.0
libtpu: 0.0.40
codegen_flags: <defaults>
</compile_context>

<pallas_src>
import jax
import jax.numpy as jnp
from jax.experimental import pallas as pl
from jax.experimental.pallas import tpu as pltpu

EPS = 1e-5


def basic_block1d_kernel(x_ref, scale_ref, shift_ref, wa_ref, wb_ref,
                         se_w1_ref, se_w2_ref, pool_ref, expand_ref, o_ref):
    f32 = jnp.float32
    x = x_ref[...].astype(f32)              # (C, NL)  lane-dense activation slab
    scale = scale_ref[...]                  # (C, 1)   folded BN scale (f32)
    shift = shift_ref[...]                  # (C, 1)   folded BN shift (f32)
    wa = wa_ref[...]                        # (C, C)   folded layers1 conv chain
    wb = wb_ref[...]                        # (C, C)   folded layers2 conv chain
    se_w1 = se_w1_ref[...]                  # (Cr, C)  SE fc1 (f32)
    se_w2 = se_w2_ref[...]                  # (C, Cr)  SE fc2 (f32)
    pool = pool_ref[...]                    # (NL, NB) segmented mean over L lanes
    expand = expand_ref[...]                # (NB, NL) segmented gate broadcast

    def branch(h, w):                       # BN -> ReLU -> 3 folded k=1 convs
        a = jnp.maximum(h * scale + shift, 0.0)          # one broadcast per branch
        return jnp.dot(w, a.astype(w.dtype), preferred_element_type=f32)  # (C, NL)

    def se(h):                              # shared SELayer, batched over NB samples
        y = jnp.dot(h, pool, preferred_element_type=f32)                     # (C, NB)
        z = jnp.maximum(jnp.dot(se_w1, y, preferred_element_type=f32), 0.0)  # (Cr, NB)
        s = jax.nn.sigmoid(jnp.dot(se_w2, z, preferred_element_type=f32))    # (C, NB)
        return h * jnp.dot(s, expand, preferred_element_type=f32)            # (C, NL)

    out = x + se(branch(x, wa))             # layers1 -> SE -> + residual (x)
    out = out + se(branch(out, wb))         # layers2 -> SE -> + residual2
    o_ref[...] = out.astype(o_ref.dtype)    # single lane-dense store


def _num_tensorcores():
    """Best-effort TensorCore count (>=2 on megacore/v7x); safe fallback of 1."""
    try:
        info = pltpu.get_tpu_info()
        for attr in ('num_cores', 'num_tensorcores', 'num_tensor_cores',
                     'tensorcores_per_chip', 'cores_per_chip', 'core_count'):
            v = getattr(info, attr, None)
            if v is not None:
                n = int(v)
                if n >= 1:
                    return n
    except Exception:
        pass
    return 1


def basic_block1d(x_ncl, p, *, mxu_dtype=jnp.bfloat16, num_cores=None):
    """x_ncl: (N, C, L) float32, native PyTorch layout. Returns (N, C, L)."""
    N, C, L = x_ncl.shape
    Cr = p['se_w1'].shape[0]                # C // reduction
    f32 = jnp.float32

    # Fold the conv chains once at trace time (kernel_size=1):
    #   conv1_2(conv1_1(conv1(h))) == (w3 @ w2 @ w1) @ h
    wa = (p['w3a'] @ p['w2a'] @ p['w1a']).astype(mxu_dtype)
    wb = (p['w3b'] @ p['w2b'] @ p['w1b']).astype(mxu_dtype)

    # Fold inference BatchNorm (bn2, shared by both branches) into scale/shift.
    scale_v = p['gamma'].astype(f32) * jax.lax.rsqrt(p['var'].astype(f32) + EPS)
    shift_v = p['beta'].astype(f32) - p['mean'].astype(f32) * scale_v
    scale = scale_v.reshape(C, 1)
    shift = shift_v.reshape(C, 1)

    se_w1 = p['se_w1'].astype(f32)          # (Cr, C)
    se_w2 = p['se_w2'].astype(f32)          # (C, Cr)

    # Lane-dense re-pack: (N, C, L) -> (C, N*L).  One-time few-KB wrapper
    # transpose; the kernel only ever sees lane-dense slabs.
    x2d = jnp.transpose(x_ncl, (1, 0, 2)).reshape(C, N * L)

    # Grid: single step on single-TC parts (v5e/v6e); 2-way "parallel" batch
    # split only when a second TensorCore exists AND each half stays a
    # multiple of 128 lanes.  TODO(synk): pad / uneven-split odd batches on v7x.
    if num_cores is None:
        num_cores = _num_tensorcores()
    G = 2 if (num_cores >= 2 and N % 2 == 0 and ((N // 2) * L) % 128 == 0) else 1
    NB = N // G                              # samples per grid block
    NL = NB * L                              # lanes per grid block

    # Constant segmented-pool / segmented-broadcast matrices (per grid block):
    # pool[i, n] = 1/L iff lane i belongs to sample n; expand = indicator.
    seg = jnp.repeat(jnp.arange(NB), L)                                # (NL,)
    expand = (jnp.arange(NB)[:, None] == seg[None, :]).astype(f32)     # (NB, NL)
    pool = expand.T / jnp.asarray(L, f32)                              # (NL, NB)

    const = lambda shape: pl.BlockSpec(shape, lambda g: (0, 0))

    # VMEM budget (matters on v7x's 64 MiB part for very large L): the in/out
    # activation slabs are double-buffered; raise the scoped limit only when
    # the estimate exceeds the default headroom (never triggered at test size).
    act_bytes = C * NL * jnp.dtype(x_ncl.dtype).itemsize
    est_vmem = 4 * act_bytes + 2 * C * C * jnp.dtype(mxu_dtype).itemsize + (1 << 20)
    cp_kwargs = dict(dimension_semantics=("parallel",))
    if est_vmem > 24 * (1 << 20):
        cp_kwargs["vmem_limit_bytes"] = int(min(2 * est_vmem, 60 * (1 << 20)))

    out2d = pl.pallas_call(
        basic_block1d_kernel,
        out_shape=jax.ShapeDtypeStruct((C, N * L), x_ncl.dtype),
        grid=(G,),
        in_specs=[
            pl.BlockSpec((C, NL), lambda g: (0, g)),   # activation slab
            const((C, 1)),                             # BN scale
            const((C, 1)),                             # BN shift
            const((C, C)),                             # folded W (branch 1)
            const((C, C)),                             # folded W (branch 2)
            const((Cr, C)),                            # SE fc1
            const((C, Cr)),                            # SE fc2
            const((NL, NB)),                           # segmented mean matrix
            const((NB, NL)),                           # segmented gate broadcast
        ],
        out_specs=pl.BlockSpec((C, NL), lambda g: (0, g)),
        compiler_params=pltpu.CompilerParams(**cp_kwargs),
    )(x2d, scale, shift, wa, wb, se_w1, se_w2, pool, expand)

    # Back to the native PyTorch layout.
    return out2d.reshape(C, N, L).transpose(1, 0, 2)


def reference(x_ncl, p):
    """Pure-JAX reference mirroring the (quirky) PyTorch forward."""
    x = x_ncl.astype(jnp.float32)

    def bn_relu(h):
        z = (h - p['mean'][None, :, None]) / jnp.sqrt(p['var'][None, :, None] + EPS)
        return jnp.maximum(z * p['gamma'][None, :, None] + p['beta'][None, :, None], 0.0)

    def conv(h, w):                          # w: (Cout, Cin), kernel_size=1
        return jnp.einsum('ncl,oc->nol', h, w)

    def se(h):
        y = jnp.mean(h, axis=2)              # (N, C)
        y = jnp.maximum(y @ p['se_w1'].T, 0.0)
        y = jax.nn.sigmoid(y @ p['se_w2'].T)
        return h * y[:, :, None]

    h = bn_relu(x)
    h = conv(conv(conv(h, p['w1a']), p['w2a']), p['w3a'])
    out = x + se(h)
    res2 = out
    h = bn_relu(out)
    h = conv(conv(conv(h, p['w1b']), p['w2b']), p['w3b'])
    return res2 + se(h)


def make_params(key, planes, reduction=16):
    Cr = planes // reduction
    keys = jax.random.split(key, 12)
    std = 0.1
    return {
        'gamma': 0.5 + jax.random.uniform(keys[0], (planes,), jnp.float32),
        'beta': std * jax.random.normal(keys[1], (planes,), jnp.float32),
        'mean': std * jax.random.normal(keys[2], (planes,), jnp.float32),
        'var': 0.5 + jax.random.uniform(keys[3], (planes,), jnp.float32),
        'w1a': std * jax.random.normal(keys[4], (planes, planes), jnp.float32),
        'w2a': std * jax.random.normal(keys[5], (planes, planes), jnp.float32),
        'w3a': std * jax.random.normal(keys[6], (planes, planes), jnp.float32),
        'w1b': std * jax.random.normal(keys[7], (planes, planes), jnp.float32),
        'w2b': std * jax.random.normal(keys[8], (planes, planes), jnp.float32),
        'w3b': std * jax.random.normal(keys[9], (planes, planes), jnp.float32),
        'se_w1': std * jax.random.normal(keys[10], (Cr, planes), jnp.float32),
        'se_w2': std * jax.random.normal(keys[11], (planes, Cr), jnp.float32),
    }


if __name__ == "__main__":
    # L = 128 keeps the lane axis dense even for a single sample.
    N, C, L = 2, 64, 128                     # inplanes == planes == 64
    key = jax.random.PRNGKey(0)
    kx, kp = jax.random.split(key)
    x = jax.random.normal(kx, (N, C, L), jnp.float32)   # PyTorch (N, C, L)
    params = make_params(kp, C)

    ref = jax.block_until_ready(reference(x, params))

    # 1) Functional check with f32 MXU operands (tolerance covers the benign
    #    rounding-order change from folding the conv chain and the SE pool
    #    expressed as a matmul).
    fwd_f32 = jax.jit(lambda xx, pp: basic_block1d(xx, pp, mxu_dtype=jnp.float32))
    out_f32 = jax.block_until_ready(fwd_f32(x, params))
    assert out_f32.shape == (N, C, L), out_f32.shape
    assert jnp.allclose(out_f32, ref, rtol=1e-2, atol=1e-2), \
        float(jnp.max(jnp.abs(out_f32 - ref)))

    # 2) Default fast path: bf16 MXU operands, f32 accumulation + f32
    #    elementwise math.  Looser tolerance covers bf16 operand rounding.
    fwd = jax.jit(basic_block1d)
    out = jax.block_until_ready(fwd(x, params))
    assert out.shape == (N, C, L), out.shape
    assert jnp.allclose(out, ref, rtol=5e-2, atol=5e-2), \
        float(jnp.max(jnp.abs(out - ref)))

    print("KERNEL_OK")
</pallas_src>

<mosaic_0001>
module attributes {stable_mosaic.version = 11 : i64} {
  func.func @basic_block1d_kernel(%arg0: i32, %arg1: memref<64x256xf32, #tpu.memory_space<vmem>>, %arg2: memref<64x1xf32, #tpu.memory_space<vmem>>, %arg3: memref<64x1xf32, #tpu.memory_space<vmem>>, %arg4: memref<64x64xf32, #tpu.memory_space<vmem>>, %arg5: memref<64x64xf32, #tpu.memory_space<vmem>>, %arg6: memref<4x64xf32, #tpu.memory_space<vmem>>, %arg7: memref<64x4xf32, #tpu.memory_space<vmem>>, %arg8: memref<256x2xf32, #tpu.memory_space<vmem>>, %arg9: memref<2x256xf32, #tpu.memory_space<vmem>>, %arg10: memref<64x256xf32, #tpu.memory_space<vmem>>) attributes {dimension_semantics = [#tpu.dimension_semantics<parallel>], iteration_bounds = array<i64: 1>, scalar_prefetch = 0 : i64, scratch_operands = 0 : i64, tpu.core_type = #tpu.core_type<tc>, window_params = [{transform_indices = @transform_0, window_bounds = array<i64: 64, 256>}, {pipeline_mode = #tpu.pipeline_mode<synchronous>, transform_indices = @transform_1, window_bounds = array<i64: 64, 1>}, {pipeline_mode = #tpu.pipeline_mode<synchronous>, transform_indices = @transform_2, window_bounds = array<i64: 64, 1>}, {pipeline_mode = #tpu.pipeline_mode<synchronous>, transform_indices = @transform_3, window_bounds = array<i64: 64, 64>}, {pipeline_mode = #tpu.pipeline_mode<synchronous>, transform_indices = @transform_4, window_bounds = array<i64: 64, 64>}, {pipeline_mode = #tpu.pipeline_mode<synchronous>, transform_indices = @transform_5, window_bounds = array<i64: 4, 64>}, {pipeline_mode = #tpu.pipeline_mode<synchronous>, transform_indices = @transform_6, window_bounds = array<i64: 64, 4>}, {pipeline_mode = #tpu.pipeline_mode<synchronous>, transform_indices = @transform_7, window_bounds = array<i64: 256, 2>}, {pipeline_mode = #tpu.pipeline_mode<synchronous>, transform_indices = @transform_8, window_bounds = array<i64: 2, 256>}, {transform_indices = @transform_9, window_bounds = array<i64: 64, 256>}]} {
    %c0 = arith.constant 0 : index
    %c0_0 = arith.constant 0 : index
    %0 = vector.load %arg1[%c0, %c0_0] : memref<64x256xf32, #tpu.memory_space<vmem>>, vector<64x256xf32>
    %c0_1 = arith.constant 0 : index
    %c0_2 = arith.constant 0 : index
    %1 = vector.load %arg2[%c0_1, %c0_2] : memref<64x1xf32, #tpu.memory_space<vmem>>, vector<64x1xf32>
    %c0_3 = arith.constant 0 : index
    %c0_4 = arith.constant 0 : index
    %2 = vector.load %arg3[%c0_3, %c0_4] : memref<64x1xf32, #tpu.memory_space<vmem>>, vector<64x1xf32>
    %c0_5 = arith.constant 0 : index
    %c0_6 = arith.constant 0 : index
    %3 = vector.load %arg4[%c0_5, %c0_6] : memref<64x64xf32, #tpu.memory_space<vmem>>, vector<64x64xf32>
    %c0_7 = arith.constant 0 : index
    %c0_8 = arith.constant 0 : index
    %4 = vector.load %arg5[%c0_7, %c0_8] : memref<64x64xf32, #tpu.memory_space<vmem>>, vector<64x64xf32>
    %c0_9 = arith.constant 0 : index
    %c0_10 = arith.constant 0 : index
    %5 = vector.load %arg6[%c0_9, %c0_10] : memref<4x64xf32, #tpu.memory_space<vmem>>, vector<4x64xf32>
    %c0_11 = arith.constant 0 : index
    %c0_12 = arith.constant 0 : index
    %6 = vector.load %arg7[%c0_11, %c0_12] : memref<64x4xf32, #tpu.memory_space<vmem>>, vector<64x4xf32>
    %c0_13 = arith.constant 0 : index
    %c0_14 = arith.constant 0 : index
    %7 = vector.load %arg8[%c0_13, %c0_14] : memref<256x2xf32, #tpu.memory_space<vmem>>, vector<256x2xf32>
    %c0_15 = arith.constant 0 : index
    %c0_16 = arith.constant 0 : index
    %8 = vector.load %arg9[%c0_15, %c0_16] : memref<2x256xf32, #tpu.memory_space<vmem>>, vector<2x256xf32>
    %9 = vector.broadcast %1 : vector<64x1xf32> to vector<64x256xf32>
    %10 = arith.mulf %0, %9 : vector<64x256xf32>
    %11 = vector.broadcast %2 : vector<64x1xf32> to vector<64x256xf32>
    %12 = arith.addf %10, %11 : vector<64x256xf32>
    %cst = arith.constant 0.000000e+00 : f32
    %13 = vector.broadcast %cst : f32 to vector<64x256xf32>
    %14 = arith.maximumf %12, %13 : vector<64x256xf32>
    %cst_17 = arith.constant dense<0.000000e+00> : vector<64x256xf32>
    %15 = tpu.matmul %3, %14, %cst_17 {dimension_numbers = #tpu.dot_dimension_numbers<[1], [0], [0], [1], [0, 0, 1, 1], [], []>} : vector<64x64xf32>, vector<64x256xf32>, vector<64x256xf32> -> vector<64x256xf32>
    %cst_18 = arith.constant dense<0.000000e+00> : vector<64x2xf32>
    %16 = tpu.matmul %15, %7, %cst_18 {dimension_numbers = #tpu.dot_dimension_numbers<[1], [0], [0], [1], [0, 0, 1, 1], [], []>} : vector<64x256xf32>, vector<256x2xf32>, vector<64x2xf32> -> vector<64x2xf32>
    %cst_19 = arith.constant dense<0.000000e+00> : vector<4x2xf32>
    %17 = tpu.matmul %5, %16, %cst_19 {dimension_numbers = #tpu.dot_dimension_numbers<[1], [0], [0], [1], [0, 0, 1, 1], [], []>} : vector<4x64xf32>, vector<64x2xf32>, vector<4x2xf32> -> vector<4x2xf32>
    %cst_20 = arith.constant 0.000000e+00 : f32
    %18 = vector.broadcast %cst_20 : f32 to vector<4x2xf32>
    %19 = arith.maximumf %17, %18 : vector<4x2xf32>
    %cst_21 = arith.constant dense<0.000000e+00> : vector<64x2xf32>
    %20 = tpu.matmul %6, %19, %cst_21 {dimension_numbers = #tpu.dot_dimension_numbers<[1], [0], [0], [1], [0, 0, 1, 1], [], []>} : vector<64x4xf32>, vector<4x2xf32>, vector<64x2xf32> -> vector<64x2xf32>
    %21 = arith.negf %20 : vector<64x2xf32>
    %22 = math.exp %21 : vector<64x2xf32>
    %cst_22 = arith.constant 1.000000e+00 : f32
    %23 = vector.broadcast %cst_22 : f32 to vector<64x2xf32>
    %24 = arith.addf %23, %22 : vector<64x2xf32>
    %25 = arith.divf %23, %24 : vector<64x2xf32>
    %cst_23 = arith.constant dense<0.000000e+00> : vector<64x256xf32>
    %26 = tpu.matmul %25, %8, %cst_23 {dimension_numbers = #tpu.dot_dimension_numbers<[1], [0], [0], [1], [0, 0, 1, 1], [], []>} : vector<64x2xf32>, vector<2x256xf32>, vector<64x256xf32> -> vector<64x256xf32>
    %27 = arith.mulf %15, %26 : vector<64x256xf32>
    %28 = arith.addf %0, %27 : vector<64x256xf32>
    %29 = vector.broadcast %1 : vector<64x1xf32> to vector<64x256xf32>
    %30 = arith.mulf %28, %29 : vector<64x256xf32>
    %31 = vector.broadcast %2 : vector<64x1xf32> to vector<64x256xf32>
    %32 = arith.addf %30, %31 : vector<64x256xf32>
    %cst_24 = arith.constant 0.000000e+00 : f32
    %33 = vector.broadcast %cst_24 : f32 to vector<64x256xf32>
    %34 = arith.maximumf %32, %33 : vector<64x256xf32>
    %cst_25 = arith.constant dense<0.000000e+00> : vector<64x256xf32>
    %35 = tpu.matmul %4, %34, %cst_25 {dimension_numbers = #tpu.dot_dimension_numbers<[1], [0], [0], [1], [0, 0, 1, 1], [], []>} : vector<64x64xf32>, vector<64x256xf32>, vector<64x256xf32> -> vector<64x256xf32>
    %cst_26 = arith.constant dense<0.000000e+00> : vector<64x2xf32>
    %36 = tpu.matmul %35, %7, %cst_26 {dimension_numbers = #tpu.dot_dimension_numbers<[1], [0], [0], [1], [0, 0, 1, 1], [], []>} : vector<64x256xf32>, vector<256x2xf32>, vector<64x2xf32> -> vector<64x2xf32>
    %cst_27 = arith.constant dense<0.000000e+00> : vector<4x2xf32>
    %37 = tpu.matmul %5, %36, %cst_27 {dimension_numbers = #tpu.dot_dimension_numbers<[1], [0], [0], [1], [0, 0, 1, 1], [], []>} : vector<4x64xf32>, vector<64x2xf32>, vector<4x2xf32> -> vector<4x2xf32>
    %cst_28 = arith.constant 0.000000e+00 : f32
    %38 = vector.broadcast %cst_28 : f32 to vector<4x2xf32>
    %39 = arith.maximumf %37, %38 : vector<4x2xf32>
    %cst_29 = arith.constant dense<0.000000e+00> : vector<64x2xf32>
    %40 = tpu.matmul %6, %39, %cst_29 {dimension_numbers = #tpu.dot_dimension_numbers<[1], [0], [0], [1], [0, 0, 1, 1], [], []>} : vector<64x4xf32>, vector<4x2xf32>, vector<64x2xf32> -> vector<64x2xf32>
    %41 = arith.negf %40 : vector<64x2xf32>
    %42 = math.exp %41 : vector<64x2xf32>
    %cst_30 = arith.constant 1.000000e+00 : f32
    %43 = vector.broadcast %cst_30 : f32 to vector<64x2xf32>
    %44 = arith.addf %43, %42 : vector<64x2xf32>
    %45 = arith.divf %43, %44 : vector<64x2xf32>
    %cst_31 = arith.constant dense<0.000000e+00> : vector<64x256xf32>
    %46 = tpu.matmul %45, %8, %cst_31 {dimension_numbers = #tpu.dot_dimension_numbers<[1], [0], [0], [1], [0, 0, 1, 1], [], []>} : vector<64x2xf32>, vector<2x256xf32>, vector<64x256xf32> -> vector<64x256xf32>
    %47 = arith.mulf %35, %46 : vector<64x256xf32>
    %48 = arith.addf %28, %47 : vector<64x256xf32>
    %c0_32 = arith.constant 0 : index
    %c0_33 = arith.constant 0 : index
    %49 = vector.load %arg10[%c0_32, %c0_33] : memref<64x256xf32, #tpu.memory_space<vmem>>, vector<64x256xf32>
    tpu.vector_store %arg10[%c0_32, %c0_33], %48 {strides = array<i32>} : memref<64x256xf32, #tpu.memory_space<vmem>>, vector<64x256xf32>,
    return
  }
  func.func @transform_0(%arg0: i32) -> (i32, i32) {
    %c0_i32 = arith.constant 0 : i32
    %c0_i32_0 = arith.constant 0 : i32
    return %c0_i32, %arg0 : i32, i32
  }
  func.func @transform_1(%arg0: i32) -> (i32, i32) {
    %c0_i32 = arith.constant 0 : i32
    %c0_i32_0 = arith.constant 0 : i32
    %c0_i32_1 = arith.constant 0 : i32
    return %c0_i32, %c0_i32_0 : i32, i32
  }
  func.func @transform_2(%arg0: i32) -> (i32, i32) {
    %c0_i32 = arith.constant 0 : i32
    %c0_i32_0 = arith.constant 0 : i32
    %c0_i32_1 = arith.constant 0 : i32
    return %c0_i32, %c0_i32_0 : i32, i32
  }
  func.func @transform_3(%arg0: i32) -> (i32, i32) {
    %c0_i32 = arith.constant 0 : i32
    %c0_i32_0 = arith.constant 0 : i32
    %c0_i32_1 = arith.constant 0 : i32
    return %c0_i32, %c0_i32_0 : i32, i32
  }
  func.func @transform_4(%arg0: i32) -> (i32, i32) {
    %c0_i32 = arith.constant 0 : i32
    %c0_i32_0 = arith.constant 0 : i32
    %c0_i32_1 = arith.constant 0 : i32
    return %c0_i32, %c0_i32_0 : i32, i32
  }
  func.func @transform_5(%arg0: i32) -> (i32, i32) {
    %c0_i32 = arith.constant 0 : i32
    %c0_i32_0 = arith.constant 0 : i32
    %c0_i32_1 = arith.constant 0 : i32
    return %c0_i32, %c0_i32_0 : i32, i32
  }
  func.func @transform_6(%arg0: i32) -> (i32, i32) {
    %c0_i32 = arith.constant 0 : i32
    %c0_i32_0 = arith.constant 0 : i32
    %c0_i32_1 = arith.constant 0 : i32
    return %c0_i32, %c0_i32_0 : i32, i32
  }
  func.func @transform_7(%arg0: i32) -> (i32, i32) {
    %c0_i32 = arith.constant 0 : i32
    %c0_i32_0 = arith.constant 0 : i32
    %c0_i32_1 = arith.constant 0 : i32
    return %c0_i32, %c0_i32_0 : i32, i32
  }
  func.func @transform_8(%arg0: i32) -> (i32, i32) {
    %c0_i32 = arith.constant 0 : i32
    %c0_i32_0 = arith.constant 0 : i32
    %c0_i32_1 = arith.constant 0 : i32
    return %c0_i32, %c0_i32_0 : i32, i32
  }
  func.func @transform_9(%arg0: i32) -> (i32, i32) {
    %c0_i32 = arith.constant 0 : i32
    %c0_i32_0 = arith.constant 0 : i32
    return %c0_i32, %arg0 : i32, i32
  }
}

</mosaic_0001>

<bundles_post_ra>
// kernel: _lambda_.1
= control target key start
LH: loop header
LB: loop body
LE: loop exit
PB: predicated region body
PF: predicated region fallthrough
CT: control target
= control target key end

     0   :  { %v1997_v0 = vmov 0   ;;  %v3016_v17 = vmov 0.0   ;;  %vm250_vm0 = vcmask 523264   ;;  %vm1999_vm1 = vmmov 0   ;;  %s3006_s2 = inlined_call_operand.vmem [shape: f32[64,1], index: 2, kind: input, shape index: {}]   ;;  %s3007_s1 = inlined_call_operand.vmem [shape: f32[64,1], index: 1, kind: input, shape index: {}]   ;;  %s3008_s7 = inlined_call_operand.vmem [shape: f32[256,2], index: 7, kind: input, shape index: {}]   ;;  %s3009_s0 = inlined_call_operand.vmem [shape: f32[64,256], index: 0, kind: input, shape index: {}]   ;;  %s3010_s3 = inlined_call_operand.vmem [shape: f32[64,64], index: 3, kind: input, shape index: {}]   ;;  %s3011_s5 = inlined_call_operand.vmem [shape: f32[4,64], index: 5, kind: input, shape index: {}]   ;;  %s3012_s6 = inlined_call_operand.vmem [shape: f32[64,4], index: 6, kind: input, shape index: {}]   ;;  %s3013_s8 = inlined_call_operand.vmem [shape: f32[2,256], index: 8, kind: input, shape index: {}]   ;;  %s3014_s4 = inlined_call_operand.vmem [shape: f32[64,64], index: 4, kind: input, shape index: {}]   ;;  %s3015_s9 = inlined_call_operand.vmem [shape: f32[64,256], index: 9, kind: output, shape index: {}]  }
   0x1   :  { %1932 = vset.pattern.permute.xlu1 %v1997_v0  ;;  %1931 = vset.pattern.permute.xlu0 %v1997_v0  ;;  %v63_v1 = vld [vmem:[%s3006_s2 + $0x38] sm:$0xff]  ;;  %v54_v3 = vld [vmem:[%s3007_s1 + $0x30] sm:$0xff]  ;;  %v53_v4 = vld [vmem:[%s3007_s1 + $0x28] sm:$0xff]  ;;  %vm567_vm2 = vcmask 31744   ;;  %vm592_vm3 = vcmask 1043456   ;;  %vm783_vm4 = vcmask 1041408  }
   0x2   :  { %v55_v2 = vld [vmem:[%s3007_s1 + $0x38] sm:$0xff]  ;;  %215 = vperm.xlu1 %1932, %v63_v1   ;;  %v62_v5 = vld [vmem:[%s3006_s2 + $0x30] sm:$0xff]  ;;  %v52_v6 = vld [vmem:[%s3007_s1 + $0x20] sm:$0xff]  ;;  %339 = vmatprep.mubr.f32.mxu0 %v3016_v17  ;;  %vm758_vm5 = vcmask 15360  }
   0x3   :  { %159 = vperm.xlu0 %1931, %v55_v2   ;;  %v61_v7 = vld [vmem:[%s3006_s2 + $0x28] sm:$0xff]  ;;  %v51_v8 = vld [vmem:[%s3007_s1 + $0x18] sm:$0xff]  ;;  %v60_v9 = vld [vmem:[%s3006_s2 + $0x20] sm:$0xff] }
   0x4   :  { %v50_v10 = vld [vmem:[%s3007_s1 + $0x10] sm:$0xff]  ;;  %v59_v11 = vld [vmem:[%s3006_s2 + $0x18] sm:$0xff]  ;;  %v49_v12 = vld [vmem:[%s3007_s1 + $0x8] sm:$0xff] }
   0x5   :  { %v58_v13 = vld [vmem:[%s3006_s2 + $0x10] sm:$0xff]  ;;  %v48_v14 = vld [vmem:[%s3007_s1] sm:$0xff]  ;;  %v57_v15 = vld [vmem:[%s3006_s2 + $0x8] sm:$0xff] }
   0x6   :  { %149 = vperm.xlu1 %1932, %v53_v4   ;;  %v56_v16 = vld [vmem:[%s3006_s2] sm:$0xff]  ;;  %v2102_v18 = vld [vmem:[%s3008_s7 + $0xf8] sm:$0xff]  ;;  %v2112_v20 = vld [vmem:[%s3008_s7 + $0xf0] sm:$0xff] }
   0x7   :  { %154 = vperm.xlu0 %1931, %v54_v3   ;;  %v2107_v19 = vld [vmem:[%s3008_s7 + $0x78] sm:$0xff]  ;;  %1712 = vmatprep.subr.mxu1 %v2102_v18  ;;  %v2118_v21 = vld [vmem:[%s3008_s7 + $0x70] sm:$0xff]  ;;  %v2124_v22 = vld [vmem:[%s3008_s7 + $0xe8] sm:$0xff] }
   0x8   :  { %1713 = vmatpush3.msra.mxu1 %v2107_v19  ;;  %v2130_v23 = vld [vmem:[%s3008_s7 + $0x68] sm:$0xff]  ;;  %v2136_v24 = vld [vmem:[%s3008_s7 + $0xe0] sm:$0xff]  ;;  %v2148_v26 = vld [vmem:[%s3008_s7 + $0xd8] sm:$0xff] }
   0x9   :  { %1714 = vmatprep.subr.mxu1 %v2112_v20  ;;  %v2142_v25 = vld [vmem:[%s3008_s7 + $0x60] sm:$0xff]  ;;  %v2154_v27 = vld [vmem:[%s3008_s7 + $0x58] sm:$0xff]  ;;  %v2160_v28 = vld [vmem:[%s3008_s7 + $0xd0] sm:$0xff] }
   0xa   :  { %144 = vperm.xlu1 %1932, %v52_v6   ;;  %1715 = vmatpush3.msra.mxu1 %v2118_v21  ;;  %v2166_v29 = vld [vmem:[%s3008_s7 + $0x50] sm:$0xff]  ;;  %v2172_v30 = vld [vmem:[%s3008_s7 + $0xc8] sm:$0xff]  ;;  %v2184_v32 = vld [vmem:[%s3008_s7 + $0xc0] sm:$0xff] }
   0xb   :  { %210 = vperm.xlu0 %1931, %v62_v5   ;;  %1716 = vmatprep.subr.mxu1 %v2124_v22  ;;  %v2178_v31 = vld [vmem:[%s3008_s7 + $0x48] sm:$0xff]  ;;  %v2190_v33 = vld [vmem:[%s3008_s7 + $0x40] sm:$0xff]  ;;  %v2196_v34 = vld [vmem:[%s3008_s7 + $0xb8] sm:$0xff] }
   0xc   :  { %1717 = vmatpush3.msra.mxu1 %v2130_v23  ;;  %v2202_v35 = vld [vmem:[%s3008_s7 + $0x38] sm:$0xff]  ;;  %v2208_v36 = vld [vmem:[%s3008_s7 + $0xb0] sm:$0xff]  ;;  %v2220_v38 = vld [vmem:[%s3008_s7 + $0xa8] sm:$0xff] }
   0xd   :  { %1718 = vmatprep.subr.mxu1 %v2136_v24  ;;  %v2214_v37 = vld [vmem:[%s3008_s7 + $0x30] sm:$0xff]  ;;  %v2226_v39 = vld [vmem:[%s3008_s7 + $0x28] sm:$0xff]  ;;  %v2232_v40 = vld [vmem:[%s3008_s7 + $0xa0] sm:$0xff] }
   0xe   :  { %139 = vperm.xlu1 %1932, %v51_v8   ;;  %1719 = vmatpush3.msra.mxu1 %v2142_v25  ;;  %v2238_v41 = vld [vmem:[%s3008_s7 + $0x20] sm:$0xff]  ;;  %v2244_v42 = vld [vmem:[%s3008_s7 + $0x98] sm:$0xff]  ;;  %v2256_v44 = vld [vmem:[%s3008_s7 + $0x90] sm:$0xff] }
   0xf   :  { %205 = vperm.xlu0 %1931, %v61_v7   ;;  %1720 = vmatprep.subr.mxu1 %v2148_v26  ;;  %v2250_v43 = vld [vmem:[%s3008_s7 + $0x18] sm:$0xff]  ;;  %v2262_v45 = vld [vmem:[%s3008_s7 + $0x10] sm:$0xff]  ;;  %v2292_v55 = vld [vmem:[%s3009_s0 + $0x60] sm:$0xff] }
  0x10   :  { %1721 = vmatpush3.msra.mxu1 %v2154_v27  ;;  %v2270_v46 = vld [vmem:[%s3009_s0 + $0x78] sm:$0xff]  ;;  %v2275_v47 = vld [vmem:[%s3009_s0 + $0x70] sm:$0xff]  ;;  %v2297_v56 = vld [vmem:[%s3009_s0 + $0x68] sm:$0xff] }
  0x11   :  { %1722 = vmatprep.subr.mxu1 %v2160_v28  ;;  %3078 = vst [vmem:[#allocation2_spill] sm:$0xff] %v2270_v46  ;;  %3079 = vst [vmem:[#allocation3_spill] sm:$0xff] %v2275_v47  ;;  %v2308_v62 = vld [vmem:[%s3009_s0 + $0x50] sm:$0xff]  ;;  %v2313_v63 = vld [vmem:[%s3009_s0 + $0x58] sm:$0xff] }
  0x12   :  { %134 = vperm.xlu1 %1932, %v50_v10   ;;  %1723 = vmatpush3.msra.mxu1 %v2166_v29  ;;  %3084 = vst [vmem:[#allocation8_spill] sm:$0xff] %v2308_v62  ;;  %3085 = vst [vmem:[#allocation9_spill] sm:$0xff] %v2313_v63  ;;  %v2328_v8 = vld [vmem:[%s3009_s0 + $0x40] sm:$0xff] }
  0x13   :  { %200 = vperm.xlu0 %1931, %v60_v9   ;;  %1724 = vmatprep.subr.mxu1 %v2172_v30  ;;  %3088 = vst [vmem:[#allocation12_spill] sm:$0xff] %v2328_v8  ;;  %v2333_v9 = vld [vmem:[%s3009_s0 + $0x48] sm:$0xff] }
  0x14   :  { %1725 = vmatpush3.msra.mxu1 %v2178_v31  ;;  %3089 = vst [vmem:[#allocation13_spill] sm:$0xff] %v2333_v9 }
  0x15   :  { %1726 = vmatprep.subr.mxu1 %v2184_v32 }
  0x16   :  { %129 = vperm.xlu1 %1932, %v49_v12   ;;  %1727 = vmatpush3.msra.mxu1 %v2190_v33 }
  0x17   :  { %195 = vperm.xlu0 %1931, %v59_v11   ;;  %1728 = vmatprep.subr.mxu1 %v2196_v34 }
  0x18   :  { %1729 = vmatpush3.msra.mxu1 %v2202_v35 }
  0x19   :  { %1730 = vmatprep.subr.mxu1 %v2208_v36 }
  0x1a   :  { %124 = vperm.xlu1 %1932, %v48_v14   ;;  %1731 = vmatpush3.msra.mxu1 %v2214_v37 }
  0x1b   :  { %190 = vperm.xlu0 %1931, %v58_v13   ;;  %1732 = vmatprep.subr.mxu1 %v2220_v38 }
  0x1c   :  { %1733 = vmatpush3.msra.mxu1 %v2226_v39 }
  0x1d   :  { %1734 = vmatprep.subr.mxu1 %v2232_v40 }
  0x1e   :  { %180 = vperm.xlu1 %1932, %v56_v16   ;;  %1735 = vmatpush3.msra.mxu1 %v2238_v41 }
  0x1f   :  { %185 = vperm.xlu0 %1931, %v57_v15   ;;  %1736 = vmatprep.subr.mxu1 %v2244_v42 }
  0x20   :  { %1737 = vmatpush3.msra.mxu1 %v2250_v43 }
  0x21   :  { %1738 = vmatprep.subr.mxu1 %v2256_v44 }
  0x22   :  { %1739 = vmatpush3.msra.mxu1 %v2262_v45 }
  0x7d   :  { %v2277_v48 = vpop.permute.xlu1 %215 }
  0x7e   :  { %3080 = vst [vmem:[#allocation4_spill] sm:$0xff] %v2277_v48  ;;  %v2279_v49 = vpop.permute.xlu0 %159 }
  0x7f   :  { %3081 = vst [vmem:[#allocation5_spill] sm:$0xff] %v2279_v49  ;;  %v177_v50 = vmul.f32 %v2279_v49, %v2270_v46  ;;  %v176_v51 = vmul.f32 %v2279_v49, %v2275_v47 }
  0x81   :  { %v233_v52 = vadd.f32 %v2277_v48, %v177_v50  ;;  %v232_v53 = vadd.f32 %v2277_v48, %v176_v51  ;;  %v2299_v57 = vpop.permute.xlu1 %149  ;;  %v2348_v51 = vld [vmem:[%s3009_s0 + $0x30] sm:$0xff] }
  0x82   :  { %v2287_v54 = vpop.permute.xlu0 %154  ;;  %3083 = vst [vmem:[#allocation7_spill] sm:$0xff] %v2299_v57  ;;  %v172_v4 = vmul.f32 %v2299_v57, %v2308_v62  ;;  %v173_v5 = vmul.f32 %v2299_v57, %v2313_v63  ;;  %3092 = vst [vmem:[#allocation16_spill] sm:$0xff] %v2348_v51 }
  0x83   :  { %3082 = vst [vmem:[#allocation6_spill] sm:$0xff] %v2287_v54  ;;  %v249_v58 = vmax.f32 %v233_v52, 0.0  ;;  %v248_v59 = vmax.f32 %v232_v53, 0.0  ;;  %v174_v60 = vmul.f32 %v2287_v54, %v2292_v55  ;;  %v175_v61 = vmul.f32 %v2287_v54, %v2297_v56  ;;  %v2353_v52 = vld [vmem:[%s3009_s0 + $0x38] sm:$0xff] }
  0x84   :  { %3093 = vst [vmem:[#allocation17_spill] sm:$0xff] %v2353_v52 }
  0x85   :  { %291 = vmatprep.subr.mxu0 %v249_v58  ;;  %v2317_v1 = vpop.permute.xlu1 %144 }
  0x86   :  { %v2315_v0 = vpop.permute.xlu0 %210  ;;  %3087 = vst [vmem:[#allocation11_spill] sm:$0xff] %v2317_v1  ;;  %292 = vmatpush1.msra.mxu0 %v248_v59  ;;  %v170_v14 = vmul.f32 %v2317_v1, %v2328_v8  ;;  %v171_v15 = vmul.f32 %v2317_v1, %v2333_v9 }
  0x87   :  { %3086 = vst [vmem:[#allocation10_spill] sm:$0xff] %v2315_v0  ;;  %v231_v2 = vadd.f32 %v2315_v0, %v175_v61  ;;  %v230_v3 = vadd.f32 %v2315_v0, %v174_v60 }
  0x89   :  { %v247_v6 = vmax.f32 %v231_v2, 0.0  ;;  %v246_v7 = vmax.f32 %v230_v3, 0.0  ;;  %v2337_v11 = vpop.permute.xlu1 %139 }
  0x8a   :  { %v2335_v10 = vpop.permute.xlu0 %205  ;;  %3091 = vst [vmem:[#allocation15_spill] sm:$0xff] %v2337_v11  ;;  %v168_v61 = vmul.f32 %v2337_v11, %v2348_v51  ;;  %v169_v2 = vmul.f32 %v2337_v11, %v2353_v52 }
  0x8b   :  { %3090 = vst [vmem:[#allocation14_spill] sm:$0xff] %v2335_v10  ;;  %293 = vmatprep.subr.mxu0 %v247_v6  ;;  %v229_v12 = vadd.f32 %v2335_v10, %v173_v5  ;;  %v228_v13 = vadd.f32 %v2335_v10, %v172_v4  ;;  %v2368_v5 = vld [vmem:[%s3009_s0 + $0x20] sm:$0xff]  ;;  %v2373_v6 = vld [vmem:[%s3009_s0 + $0x28] sm:$0xff] }
  0x8c   :  { %294 = vmatpush1.msra.mxu0 %v246_v7  ;;  %3096 = vst [vmem:[#allocation20_spill] sm:$0xff] %v2368_v5  ;;  %3097 = vst [vmem:[#allocation21_spill] sm:$0xff] %v2373_v6 }
  0x8d   :  { %v245_v16 = vmax.f32 %v229_v12, 0.0  ;;  %v244_v50 = vmax.f32 %v228_v13, 0.0  ;;  %v2357_v58 = vpop.permute.xlu1 %134 }
  0x8e   :  { %v2355_v53 = vpop.permute.xlu0 %200  ;;  %3095 = vst [vmem:[#allocation19_spill] sm:$0xff] %v2357_v58 }
  0x8f   :  { %3094 = vst [vmem:[#allocation18_spill] sm:$0xff] %v2355_v53  ;;  %295 = vmatprep.subr.mxu0 %v245_v16  ;;  %v227_v59 = vadd.f32 %v2355_v53, %v171_v15  ;;  %v226_v60 = vadd.f32 %v2355_v53, %v170_v14  ;;  %v166_v15 = vmul.f32 %v2357_v58, %v2368_v5 }
  0x90   :  { %296 = vmatpush1.msra.mxu0 %v244_v50  ;;  %v167_v16 = vmul.f32 %v2357_v58, %v2373_v6 }
  0x91   :  { %v243_v3 = vmax.f32 %v227_v59, 0.0  ;;  %v242_v4 = vmax.f32 %v226_v60, 0.0  ;;  %v2377_v12 = vpop.permute.xlu1 %129  ;;  %v2388_v60 = vld [vmem:[%s3009_s0 + $0x10] sm:$0xff] }
  0x92   :  { %v2375_v7 = vpop.permute.xlu0 %195  ;;  %3099 = vst [vmem:[#allocation23_spill] sm:$0xff] %v2377_v12  ;;  %3100 = vst [vmem:[#allocation24_spill] sm:$0xff] %v2388_v60 }
  0x93   :  { %3098 = vst [vmem:[#allocation22_spill] sm:$0xff] %v2375_v7  ;;  %297 = vmatprep.subr.mxu0 %v243_v3  ;;  %v225_v13 = vadd.f32 %v2375_v7, %v169_v2  ;;  %v224_v14 = vadd.f32 %v2375_v7, %v168_v61  ;;  %v2397_v61 = vld [vmem:[%s3009_s0 + $0x18] sm:$0xff]  ;;  %v2402_v2 = vld [vmem:[%s3009_s0 + $0x8] sm:$0xff]  ;;  %v164_v7 = vmul.f32 %v2377_v12, %v2388_v60 }
  0x94   :  { %298 = vmatpush1.msra.mxu0 %v242_v4  ;;  %3103 = vst [vmem:[#allocation27_spill] sm:$0xff] %v2397_v61  ;;  %3104 = vst [vmem:[#allocation28_spill] sm:$0xff] %v2402_v2  ;;  %v2407_v4 = vld [vmem:[%s3009_s0] sm:$0xff]  ;;  %v165_v53 = vmul.f32 %v2377_v12, %v2397_v61 }
  0x95   :  { %v241_v50 = vmax.f32 %v225_v13, 0.0  ;;  %v240_v59 = vmax.f32 %v224_v14, 0.0  ;;  %v2392_v3 = vpop.permute.xlu1 %124  ;;  %3105 = vst [vmem:[#allocation29_spill] sm:$0xff] %v2407_v4 }
  0x96   :  { %v2390_v17 = vpop.permute.xlu0 %190  ;;  %3102 = vst [vmem:[#allocation26_spill] sm:$0xff] %v2392_v3  ;;  %v163_v58 = vmul.f32 %v2392_v3, %v2402_v2 }
  0x97   :  { %3101 = vst [vmem:[#allocation25_spill] sm:$0xff] %v2390_v17  ;;  %299 = vmatprep.subr.mxu0 %v241_v50  ;;  %v223_v13 = vadd.f32 %v2390_v17, %v167_v16  ;;  %v222_v14 = vadd.f32 %v2390_v17, %v166_v15  ;;  %v162_v16 = vmul.f32 %v2392_v3, %v2407_v4  ;;  %v64_v3 = vld [vmem:[%s3010_s3] sm:$0xff] }
  0x98   :  { %300 = vmatpush1.msra.mxu0 %v240_v59 }
  0x99   :  { %v239_v50 = vmax.f32 %v223_v13, 0.0  ;;  %v238_v10 = vmax.f32 %v222_v14, 0.0  ;;  %v2419_v5 = vpop.permute.xlu1 %180 }
  0x9a   :  { %v2417_v11 = vpop.permute.xlu0 %185  ;;  %3107 = vst [vmem:[#allocation31_spill] sm:$0xff] %v2419_v5  ;;  %v219_v17 = vadd.f32 %v2419_v5, %v163_v58  ;;  %v218_v12 = vadd.f32 %v2419_v5, %v162_v16  ;;  %v67_v58 = vld [vmem:[%s3010_s3 + $0x18] sm:$0xff]  ;;  %v2482_v16 = vld [vmem:[%s3008_s7 + $0x80] sm:$0xff] }
  0x9b   :  { %3106 = vst [vmem:[#allocation30_spill] sm:$0xff] %v2417_v11  ;;  %v220_v15 = vadd.f32 %v2417_v11, %v164_v7  ;;  %v221_v59 = vadd.f32 %v2417_v11, %v165_v53  ;;  %301 = vmatprep.subr.mxu0 %v239_v50  ;;  %v3108_v53 = vmov 0.0   ;;  %v68_v7 = vld [vmem:[%s3010_s3 + $0x20] sm:$0xff]  ;;  %v2475_v50 = vld [vmem:[%s3008_s7 + $0x8] sm:$0xff] }
  0x9c   :  { %302 = vmatpush1.msra.mxu0 %v238_v10  ;;  %v235_v14 = vmax.f32 %v219_v17, 0.0  ;;  %v234_v60 = vmax.f32 %v218_v12, 0.0  ;;  %v65_v10 = vld [vmem:[%s3010_s3 + $0x8] sm:$0xff]  ;;  %v66_v17 = vld [vmem:[%s3010_s3 + $0x10] sm:$0xff] }
  0x9d   :  { %v237_v2 = vmax.f32 %v221_v59, 0.0  ;;  %v236_v13 = vmax.f32 %v220_v15, 0.0  ;;  %v69_v12 = vld [vmem:[%s3010_s3 + $0x28] sm:$0xff]  ;;  %v2487_v15 = vld [vmem:[%s3008_s7] sm:$0xff] }
  0x9f   :  { %303 = vmatprep.subr.mxu0 %v237_v2  ;;  %v2470_v2 = vld [vmem:[%s3008_s7 + $0x88] sm:$0xff] }
  0xa0   :  { %304 = vmatpush1.msra.mxu0 %v236_v13  ;;  %1740 = vmatprep.subr.mxu1 %v2470_v2 }
  0xa1   :  { %305 = vmatprep.subr.mxu0 %v235_v14  ;;  %1741 = vmatpush3.msra.mxu1 %v2475_v50 }
  0xa2   :  { %306 = vmatpush1.msra.mxu0 %v234_v60  ;;  %v70_v60 = vld [vmem:[%s3010_s3 + $0x30] sm:$0xff]  ;;  %1742 = vmatprep.subr.mxu1 %v2482_v16 }
  0xa3   :  { %1639 = vmatmul.mubr.msk.f32.vlgmr.msra.gmra.mxu0 %vm250_vm0, %v64_v3  ;;  %1860 = vmatprep.subr.mxu0 %v3108_v53  ;;  %v71_v3 = vld [vmem:[%s3010_s3 + $0x38] sm:$0xff] }
  0xa4   :  { %345 = vmatprep.mubr.f32.mxu0 %v3108_v53  ;;  %1743 = vmatpush3.msra.mxu1 %v2487_v15 }
  0xa7   :  { %1640 = vmatmul.mubr.msk.f32.gmra.mxu0 %vm250_vm0, %v65_v10 }
  0xa8   :  { %351 = vmatprep.mubr.f32.mxu0 %v3108_v53 }
  0xab   :  { %1641 = vmatmul.mubr.msk.f32.gmra.mxu0 %vm250_vm0, %v66_v17 }
  0xac   :  { %357 = vmatprep.mubr.f32.mxu0 %v3108_v53 }
  0xaf   :  { %1642 = vmatmul.mubr.msk.f32.gmra.mxu0 %vm250_vm0, %v67_v58 }
  0xb0   :  { %363 = vmatprep.mubr.f32.mxu0 %v3108_v53 }
  0xb3   :  { %1643 = vmatmul.mubr.msk.f32.gmra.mxu0 %vm250_vm0, %v68_v7 }
  0xb4   :  { %369 = vmatprep.mubr.f32.mxu0 %v3108_v53 }
  0xb7   :  { %1644 = vmatmul.mubr.msk.f32.gmra.mxu0 %vm250_vm0, %v69_v12 }
  0xb8   :  { %375 = vmatprep.mubr.f32.mxu0 %v3108_v53 }
  0xbb   :  { %1645 = vmatmul.mubr.msk.f32.gmra.mxu0 %vm250_vm0, %v70_v60 }
  0xbc   :  { %381 = vmatprep.mubr.f32.mxu0 %v3108_v53 }
  0xbf   :  { %1646 = vmatmul.mubr.msk.f32.gmra.mxu0 %vm250_vm0, %v71_v3 }
  0xc0   :  { %1876 = vmatprep.mubr.msk.f32.mxu0 %vm1999_vm1, %v3108_v53 }
 0x163   :  { %v2491_v59 = vpop.f32.mrf.mxu0 }
 0x164   :  { %3109 = vst [vmem:[#allocation32_spill] sm:$0xff] %v2491_v59 }
 0x165   :  { %v2493_v13 = vpop.f32.mrf.mxu0 }
 0x166   :  { %3110 = vst [vmem:[#allocation33_spill] sm:$0xff] %v2493_v13  ;;  %452 = vmatprep.mubr.f32.mxu1 %v2493_v13 }
 0x167   :  { %v2496_v14 = vpop.f32.mrf.mxu0  ;;  %453 = vmatmul.mubr.f32.vlgmr.msra.gmra.mxu1 %v2491_v59 }
 0x168   :  { %3111 = vst [vmem:[#allocation34_spill] sm:$0xff] %v2496_v14 }
 0x169   :  { %v2499_v10 = vpop.f32.mrf.mxu0 }
 0x16a   :  { %3112 = vst [vmem:[#allocation35_spill] sm:$0xff] %v2499_v10  ;;  %457 = vmatprep.mubr.f32.mxu1 %v2499_v10 }
 0x16b   :  { %v2502_v17 = vpop.f32.mrf.mxu0  ;;  %458 = vmatmul.mubr.f32.gmra.mxu1 %v2496_v14 }
 0x16c   :  { %3113 = vst [vmem:[#allocation36_spill] sm:$0xff] %v2502_v17 }
 0x16d   :  { %v2505_v58 = vpop.f32.mrf.mxu0 }
 0x16e   :  { %3114 = vst [vmem:[#allocation37_spill] sm:$0xff] %v2505_v58  ;;  %462 = vmatprep.mubr.f32.mxu1 %v2505_v58 }
 0x16f   :  { %v2508_v7 = vpop.f32.mrf.mxu0  ;;  %463 = vmatmul.mubr.f32.gmra.mxu1 %v2502_v17 }
 0x170   :  { %3115 = vst [vmem:[#allocation38_spill] sm:$0xff] %v2508_v7 }
 0x171   :  { %v2511_v12 = vpop.f32.mrf.mxu0 }
 0x172   :  { %3116 = vst [vmem:[#allocation39_spill] sm:$0xff] %v2511_v12  ;;  %467 = vmatprep.mubr.f32.mxu1 %v2511_v12 }
 0x173   :  { %v2514_v60 = vpop.f32.mrf.mxu0  ;;  %468 = vmatmul.mubr.f32.gmra.mxu1 %v2508_v7 }
 0x175   :  { %v2517_v3 = vpop.f32.mrf.mxu0 }
 0x176   :  { %472 = vmatprep.mubr.f32.mxu1 %v2517_v3 }
 0x177   :  { %v2520_v5 = vpop.f32.mrf.mxu0  ;;  %473 = vmatmul.mubr.f32.gmra.mxu1 %v2514_v60 }
 0x179   :  { %v2523_v11 = vpop.f32.mrf.mxu0 }
 0x17a   :  { %477 = vmatprep.mubr.f32.mxu1 %v2523_v11 }
 0x17b   :  { %v2526_v4 = vpop.f32.mrf.mxu0  ;;  %478 = vmatmul.mubr.f32.gmra.mxu1 %v2520_v5 }
 0x17d   :  { %v2529_v61 = vpop.f32.mrf.mxu0 }
 0x17e   :  { %482 = vmatprep.mubr.f32.mxu1 %v2529_v61 }
 0x17f   :  { %v2532_v59 = vpop.f32.mrf.mxu0  ;;  %483 = vmatmul.mubr.f32.gmra.mxu1 %v2526_v4 }
 0x181   :  { %v2535_v0 = vpop.f32.mrf.mxu0 }
 0x182   :  { %3117 = vst [vmem:[#allocation40_spill] sm:$0xff] %v2535_v0  ;;  %487 = vmatprep.mubr.f32.mxu1 %v2535_v0 }
 0x183   :  { %488 = vmatmul.mubr.f32.gmra.mxu1 %v2532_v59 }
 0x184   :  { %852 = vmatprep.mubr.f32.mxu1 %v3108_v53 }
 0x227   :  { %v1744_v1 = vpop.f32.mrf.mxu1 }
 0x229   :  { %v1745_v6 = vpop.f32.mrf.mxu1 }
 0x22b   :  { %v1747_v48 = vpop.f32.mrf.mxu1 }
 0x22d   :  { %v1748_v51 = vpop.f32.mrf.mxu1 }
 0x22f   :  { %v1750_v14 = vpop.f32.mrf.mxu1 }
 0x231   :  { %v1751_v57 = vpop.f32.mrf.mxu1 }
 0x232   :  { %v1752_v12 = vadd.f32 %v1751_v57, %v1750_v14 }
 0x233   :  { %v1753_v52 = vpop.f32.mrf.mxu1 }
 0x235   :  { %v1754_v10 = vpop.f32.mrf.mxu1 }
 0x236   :  { %v1755_v63 = vadd.f32 %v1754_v10, %v1753_v52  ;;  %v2610_v52 = vld [vmem:[%s3012_s6 + $0x38] sm:$0xff] }
 0x237   :  { %v1756_v8 = vpop.f32.mrf.mxu1  ;;  %3120 = vst [vmem:[#allocation43_spill] sm:$0xff] %v2610_v52 }
 0x239   :  { %v1757_v17 = vpop.f32.mrf.mxu1 }
 0x23a   :  { %v1758_v47 = vadd.f32 %v1757_v17, %v1756_v8  ;;  %v2587_v8 = vld [vmem:[%s3012_s6 + $0x20] sm:$0xff] }
 0x23b   :  { %v1759_v13 = vpop.f32.mrf.mxu1 }
 0x23d   :  { %v1760_v46 = vpop.f32.mrf.mxu1 }
 0x23e   :  { %v1761_v0 = vadd.f32 %v1760_v46, %v1759_v13  ;;  %v1746_v46 = vadd.f32 %v1745_v6, %v1744_v1  ;;  %v2582_v1 = vld [vmem:[%s3012_s6 + $0x18] sm:$0xff]  ;;  %v2618_v6 = vld.sshfl [vmem:[%s3013_s8] sm:$0x33 pattern:$0x76325410] }
 0x23f   :  { %v1762_v49 = vpop.f32.mrf.mxu1  ;;  %3121 = vst [vmem:[#allocation44_spill] sm:$0xff] %v2618_v6  ;;  %v2622_v13 = vcombine.high %v2618_v6, %v2618_v6 }
 0x241   :  { %v1763_v54 = vpop.f32.mrf.mxu1  ;;  %3122 = vst [vmem:[#allocation45_spill] sm:$0xff] %v2622_v13  ;;  %1666 = vmatprep.subr.msk.mxu1 %vm783_vm4, %v2622_v13 }
 0x242   :  { %v1764_v58 = vadd.f32 %v1763_v54, %v1762_v49  ;;  %v1749_v49 = vadd.f32 %v1748_v51, %v1747_v48  ;;  %v2551_v54 = vld [vmem:[%s3011_s5] sm:$0xf]  ;;  %v2601_v51 = vld [vmem:[%s3012_s6 + $0x30] sm:$0xff]  ;;  %1667 = vmatpush1.msk.msra.mxu1 %vm783_vm4, %v2618_v6 }
 0x243   :  { %v1765_v9 = vpop.f32.mrf.mxu1  ;;  %3119 = vst [vmem:[#allocation42_spill] sm:$0xff] %v2601_v51  ;;  %1786 = vmatprep.subr.mxu1 %v2102_v18 }
 0x245   :  { %v1766_v62 = vpop.f32.mrf.mxu1 }
 0x246   :  { %v1767_v7 = vadd.f32 %v1766_v62, %v1765_v9  ;;  %v2596_v9 = vld [vmem:[%s3012_s6 + $0x28] sm:$0xff] }
 0x247   :  { %3118 = vst [vmem:[#allocation41_spill] sm:$0xff] %v2596_v9 }
 0x248   :  { %1861 = vmatpush3.msra.mxu0 %v1767_v7 }
 0x249   :  { %1862 = vmatprep.subr.mxu0 %v3108_v53 }
 0x24a   :  { %1863 = vmatpush3.msra.mxu0 %v1764_v58 }
 0x24b   :  { %1864 = vmatprep.subr.mxu0 %v3108_v53 }
 0x24c   :  { %1865 = vmatpush3.msra.mxu0 %v1761_v0  ;;  %v2572_v0 = vld [vmem:[%s3012_s6 + $0x10] sm:$0xff] }
 0x24d   :  { %1866 = vmatprep.subr.mxu0 %v3108_v53 }
 0x24e   :  { %1867 = vmatpush3.msra.mxu0 %v1758_v47  ;;  %v2559_v47 = vld [vmem:[%s3012_s6] sm:$0xff] }
 0x24f   :  { %1868 = vmatprep.subr.mxu0 %v3108_v53 }
 0x250   :  { %1869 = vmatpush3.msra.mxu0 %v1755_v63  ;;  %v2566_v63 = vld [vmem:[%s3012_s6 + $0x8] sm:$0xff] }
 0x251   :  { %1870 = vmatprep.subr.mxu0 %v3108_v53 }
 0x252   :  { %1871 = vmatpush3.msra.mxu0 %v1752_v12 }
 0x253   :  { %1872 = vmatprep.subr.mxu0 %v3108_v53 }
 0x254   :  { %1873 = vmatpush3.msra.mxu0 %v1749_v49 }
 0x255   :  { %1874 = vmatprep.subr.mxu0 %v3108_v53 }
 0x256   :  { %1875 = vmatpush3.msra.mxu0 %v1746_v46 }
 0x257   :  { %1877 = vmatmul.mubr.msk.f32.vlgmr.msra.gmra.mxu0 %vm250_vm0, %v2551_v54 }
 0x258   :  { %1881 = vmatprep.mubr.msk.f32.mxu0 %vm567_vm2, %v2559_v47 }
 0x317   :  { %v562_v48 = vpop.f32.mrf.mxu0 }
 0x318   :  { %v566_v57 = vmax.f32 %v562_v48, 0.0 }
 0x319   :  { %v1878_v62 = vpop.f32.mrf.mxu0 }
 0x31a   :  { %1879 = vmatprep.subr.msk.mxu0 %vm592_vm3, %v566_v57 }
 0x31b   :  { %1880 = vmatpush3.msk.msra.mxu0 %vm592_vm3, %v566_v57 }
 0x31c   :  { %1882 = vmatmul.mubr.msk.f32.vlgmr.msra.gmra.mxu0 %vm567_vm2, %v2566_v63 }
 0x31d   :  { %1884 = vmatprep.mubr.msk.f32.mxu0 %vm567_vm2, %v2572_v0 }
 0x320   :  { %1885 = vmatmul.mubr.msk.f32.gmra.mxu0 %vm567_vm2, %v2582_v1 }
 0x321   :  { %1887 = vmatprep.mubr.msk.f32.mxu0 %vm567_vm2, %v2587_v8 }
 0x324   :  { %1888 = vmatmul.mubr.msk.f32.gmra.mxu0 %vm567_vm2, %v2596_v9 }
 0x325   :  { %1890 = vmatprep.mubr.msk.f32.mxu0 %vm567_vm2, %v2601_v51 }
 0x328   :  { %1891 = vmatmul.mubr.msk.f32.gmra.mxu0 %vm567_vm2, %v2610_v52 }
 0x329   :  { %1069 = vmatprep.mubr.f32.mxu0 %v3108_v53 }
 0x3dc   :  { %v1883_v14 = vpop.f32.mrf.mxu0 }
 0x3dd   :  { %v1658_v10 = vmul.f32 -1.442695, %v1883_v14 }
 0x3de   :  { %v662_v17 = vpop.f32.mrf.mxu0 }
 0x3df   :  { %v1657_v58 = vmul.f32 -1.442695, %v662_v17  ;;  %1933 = vpow2.f32 %v1658_v10 }
 0x3e0   :  { %v1886_v7 = vpop.f32.mrf.mxu0 }
 0x3e1   :  { %1935 = vpow2.f32 %v1657_v58  ;;  %v1660_v48 = vmul.f32 -1.442695, %v1886_v7 }
 0x3e2   :  { %v672_v12 = vpop.f32.mrf.mxu0 }
 0x3e3   :  { %v1659_v49 = vmul.f32 -1.442695, %v672_v12 }
 0x3e4   :  { %v1889_v46 = vpop.f32.mrf.mxu0 }
 0x3e5   :  { %1937 = vpow2.f32 %v1659_v49  ;;  %v1662_v51 = vmul.f32 -1.442695, %v1889_v46 }
 0x3e6   :  { %v682_v57 = vpop.f32.mrf.mxu0  ;;  %1939 = vpow2.f32 %v1660_v48 }
 0x3e7   :  { %v1661_v62 = vmul.f32 -1.442695, %v682_v57 }
 0x3e8   :  { %v1892_v52 = vpop.f32.mrf.mxu0 }
 0x3e9   :  { %1941 = vpow2.f32 %v1661_v62  ;;  %v1664_v13 = vmul.f32 -1.442695, %v1892_v52 }
 0x3ea   :  { %v692_v18 = vpop.f32.mrf.mxu0  ;;  %1943 = vpow2.f32 %v1662_v51 }
 0x3eb   :  { %v1663_v17 = vmul.f32 -1.442695, %v692_v18  ;;  %v3123_v18 = vld [vmem:[#allocation39_spill] sm:$0xff] }
 0x3ec   :  { %v1934_v9 = vpop.eup %1933 }
 0x3ed   :  { %v726_v10 = vadd.f32 1.0, %v1934_v9 }
 0x3ee   :  { %v1936_v6 = vpop.eup %1935 }
 0x3ef   :  { %v725_v14 = vadd.f32 1.0, %v1936_v6 }
 0x3f1   :  { %1945 = vrcp.f32 %v725_v14  ;;  %v3124_v14 = vld [vmem:[#allocation9_spill] sm:$0xff] }
 0x3f2   :  { %v1938_v58 = vpop.eup %1937  ;;  %1947 = vpow2.f32 %v1663_v17 }
 0x3f3   :  { %1949 = vrcp.f32 %v726_v10  ;;  %v727_v7 = vadd.f32 1.0, %v1938_v58  ;;  %v1940_v12 = vpop.eup %1939 }
 0x3f4   :  { %1951 = vpow2.f32 %v1664_v13  ;;  %v728_v49 = vadd.f32 1.0, %v1940_v12  ;;  %v3129_v12 = vld [vmem:[#allocation8_spill] sm:$0xff] }
 0x3f5   :  { %1953 = vrcp.f32 %v727_v7  ;;  %v3128_v7 = vld [vmem:[#allocation38_spill] sm:$0xff] }
 0x3f6   :  { %v1942_v48 = vpop.eup %1941  ;;  %1955 = vrcp.f32 %v728_v49 }
 0x3f7   :  { %v1944_v46 = vpop.eup %1943  ;;  %v729_v57 = vadd.f32 1.0, %v1942_v48  ;;  %v3131_v48 = vld [vmem:[#allocation6_spill] sm:$0xff] }
 0x3f8   :  { %v730_v51 = vadd.f32 1.0, %v1944_v46 }
 0x3f9   :  { %1957 = vrcp.f32 %v729_v57  ;;  %v3132_v57 = vld [vmem:[#allocation5_spill] sm:$0xff] }
 0x3fa   :  { %1959 = vrcp.f32 %v730_v51 }
 0x3fe   :  { %v1946_v62 = vpop.eup %1945 }
 0x3ff   :  { %1668 = vmatmul.mubr.msk.f32.vlgmr.msra.gmra.mxu1 %vm758_vm5, %v1946_v62  ;;  %v1948_v9 = vpop.eup %1947 }
 0x400   :  { %858 = vmatprep.mubr.f32.mxu1 %v3108_v53  ;;  %1787 = vmatpush3.msra.mxu1 %v2107_v19  ;;  %v1950_v52 = vpop.eup %1949  ;;  %v731_v13 = vadd.f32 1.0, %v1948_v9  ;;  %v3133_v9 = vld [vmem:[#allocation2_spill] sm:$0xff] }
 0x401   :  { %1788 = vmatprep.subr.mxu1 %v2112_v20  ;;  %v1952_v6 = vpop.eup %1951 }
 0x402   :  { %1789 = vmatpush3.msra.mxu1 %v2118_v21  ;;  %v1954_v19 = vpop.eup %1953  ;;  %v732_v20 = vadd.f32 1.0, %v1952_v6  ;;  %1961 = vrcp.f32 %v731_v13  ;;  %v3135_v13 = vld [vmem:[#allocation36_spill] sm:$0xff] }
 0x403   :  { %1669 = vmatmul.mubr.msk.f32.gmra.mxu1 %vm758_vm5, %v1950_v52  ;;  %1790 = vmatprep.subr.mxu1 %v2124_v22  ;;  %v1956_v21 = vpop.eup %1955  ;;  %v3134_v52 = vld [vmem:[#allocation33_spill] sm:$0xff] }
 0x404   :  { %864 = vmatprep.mubr.f32.mxu1 %v3108_v53  ;;  %1791 = vmatpush3.msra.mxu1 %v2130_v23  ;;  %1963 = vrcp.f32 %v732_v20  ;;  %v3136_v20 = vld [vmem:[#allocation12_spill] sm:$0xff] }
 0x405   :  { %1792 = vmatprep.subr.mxu1 %v2136_v24 }
 0x406   :  { %1793 = vmatpush3.msra.mxu1 %v2142_v25  ;;  %v1958_v22 = vpop.eup %1957 }
 0x407   :  { %1670 = vmatmul.mubr.msk.f32.gmra.mxu1 %vm758_vm5, %v1954_v19  ;;  %1794 = vmatprep.subr.mxu1 %v2148_v26  ;;  %v1960_v23 = vpop.eup %1959 }
 0x408   :  { %870 = vmatprep.mubr.f32.mxu1 %v3108_v53  ;;  %1795 = vmatpush3.msra.mxu1 %v2154_v27 }
 0x409   :  { %1796 = vmatprep.subr.mxu1 %v2160_v28 }
 0x40a   :  { %1797 = vmatpush3.msra.mxu1 %v2166_v29 }
 0x40b   :  { %1671 = vmatmul.mubr.msk.f32.gmra.mxu1 %vm758_vm5, %v1956_v21  ;;  %1798 = vmatprep.subr.mxu1 %v2172_v30 }
 0x40c   :  { %876 = vmatprep.mubr.f32.mxu1 %v3108_v53  ;;  %1799 = vmatpush3.msra.mxu1 %v2178_v31 }
 0x40d   :  { %1800 = vmatprep.subr.mxu1 %v2184_v32 }
 0x40e   :  { %1801 = vmatpush3.msra.mxu1 %v2190_v33 }
 0x40f   :  { %1672 = vmatmul.mubr.msk.f32.gmra.mxu1 %vm758_vm5, %v1958_v22  ;;  %1802 = vmatprep.subr.mxu1 %v2196_v34  ;;  %v1962_v24 = vpop.eup %1961 }
 0x410   :  { %882 = vmatprep.mubr.f32.mxu1 %v3108_v53  ;;  %1803 = vmatpush3.msra.mxu1 %v2202_v35 }
 0x411   :  { %1804 = vmatprep.subr.mxu1 %v2208_v36  ;;  %v1964_v25 = vpop.eup %1963 }
 0x412   :  { %1805 = vmatpush3.msra.mxu1 %v2214_v37 }
 0x413   :  { %1673 = vmatmul.mubr.msk.f32.gmra.mxu1 %vm758_vm5, %v1960_v23  ;;  %1806 = vmatprep.subr.mxu1 %v2220_v38  ;;  %v3137_v23 = vld [vmem:[#allocation35_spill] sm:$0xff] }
 0x414   :  { %888 = vmatprep.mubr.f32.mxu1 %v3108_v53  ;;  %1807 = vmatpush3.msra.mxu1 %v2226_v39 }
 0x415   :  { %1808 = vmatprep.subr.mxu1 %v2232_v40 }
 0x416   :  { %1809 = vmatpush3.msra.mxu1 %v2238_v41 }
 0x417   :  { %1674 = vmatmul.mubr.msk.f32.gmra.mxu1 %vm758_vm5, %v1962_v24  ;;  %1810 = vmatprep.subr.mxu1 %v2244_v42 }
 0x418   :  { %894 = vmatprep.mubr.f32.mxu1 %v3108_v53  ;;  %1811 = vmatpush3.msra.mxu1 %v2250_v43 }
 0x419   :  { %1812 = vmatprep.subr.mxu1 %v2256_v44 }
 0x41a   :  { %1813 = vmatpush3.msra.mxu1 %v2262_v45 }
 0x41b   :  { %1675 = vmatmul.mubr.msk.f32.gmra.mxu1 %vm758_vm5, %v1964_v25  ;;  %1814 = vmatprep.subr.mxu1 %v2470_v2  ;;  %v3138_v25 = vld [vmem:[#allocation17_spill] sm:$0xff] }
 0x41c   :  { %1815 = vmatpush3.msra.mxu1 %v2475_v50 }
 0x41d   :  { %1816 = vmatprep.subr.mxu1 %v2482_v16 }
 0x41e   :  { %1817 = vmatpush3.msra.mxu1 %v2487_v15 }
 0x4bf   :  { %v854_v26 = vpop.f32.mrf.mxu1 }
 0x4c1   :  { %v856_v27 = vpop.f32.mrf.mxu1 }
 0x4c2   :  { %v902_v6 = vmul.f32 %v856_v27, %v3134_v52  ;;  %v3140_v27 = vld [vmem:[#allocation34_spill] sm:$0xff] }
 0x4c3   :  { %v860_v28 = vpop.f32.mrf.mxu1 }
 0x4c5   :  { %v862_v29 = vpop.f32.mrf.mxu1 }
 0x4c6   :  { %v904_v24 = vmul.f32 %v862_v29, %v3137_v23  ;;  %v3143_v29 = vld [vmem:[#allocation21_spill] sm:$0xff] }
 0x4c7   :  { %v866_v30 = vpop.f32.mrf.mxu1 }
 0x4c8   :  { %v905_v19 = vmul.f32 %v866_v30, %v3135_v13  ;;  %v3141_v30 = vld [vmem:[#allocation16_spill] sm:$0xff]  ;;  %v3154_v13 = vld [vmem:[#allocation18_spill] sm:$0xff] }
 0x4c9   :  { %v868_v31 = vpop.f32.mrf.mxu1 }
 0x4cb   :  { %v872_v32 = vpop.f32.mrf.mxu1 }
 0x4cd   :  { %v874_v33 = vpop.f32.mrf.mxu1 }
 0x4cf   :  { %v878_v34 = vpop.f32.mrf.mxu1 }
 0x4d0   :  { %v909_v16 = vmul.f32 %v878_v34, %v2514_v60 }
 0x4d1   :  { %v880_v35 = vpop.f32.mrf.mxu1 }
 0x4d2   :  { %v910_v45 = vmul.f32 %v880_v35, %v2517_v3  ;;  %v3126_v3 = vld [vmem:[#allocation40_spill] sm:$0xff]  ;;  %v2714_v21 = vadd.f32 %v909_v16, %v3136_v20  ;;  %v903_v35 = vmul.f32 %v860_v28, %v3140_v27  ;;  %v3155_v20 = vld [vmem:[#allocation29_spill] sm:$0xff] }
 0x4d3   :  { %v884_v36 = vpop.f32.mrf.mxu1  ;;  %v3147_v16 = vld [vmem:[#allocation20_spill] sm:$0xff] }
 0x4d4   :  { %v911_v43 = vmul.f32 %v884_v36, %v2520_v5  ;;  %v3125_v5 = vld [vmem:[#allocation3_spill] sm:$0xff] }
 0x4d5   :  { %v886_v37 = vpop.f32.mrf.mxu1 }
 0x4d6   :  { %v912_v41 = vmul.f32 %v886_v37, %v2523_v11  ;;  %v908_v11 = vmul.f32 %v874_v33, %v3123_v18  ;;  %v2699_v60 = vadd.f32 %v911_v43, %v3129_v12 }
 0x4d7   :  { %v890_v38 = vpop.f32.mrf.mxu1 }
 0x4d8   :  { %v913_v39 = vmul.f32 %v890_v38, %v2526_v4  ;;  %v3142_v38 = vld [vmem:[#allocation4_spill] sm:$0xff] }
 0x4d9   :  { %v892_v40 = vpop.f32.mrf.mxu1 }
 0x4da   :  { %v914_v42 = vmul.f32 %v892_v40, %v2529_v61  ;;  %v2686_v15 = vadd.f32 %v913_v39, %v2292_v55  ;;  %v2690_v61 = vadd.f32 %v912_v41, %v3124_v14  ;;  %v3130_v55 = vld [vmem:[#allocation13_spill] sm:$0xff]  ;;  %v3144_v41 = vld [vmem:[#allocation11_spill] sm:$0xff] }
 0x4db   :  { %v896_v44 = vpop.f32.mrf.mxu1  ;;  %v2702_v49 = vadd.f32 %v910_v45, %v3130_v55  ;;  %v941_v18 = vmul.f32 %v2714_v21, %v3144_v41  ;;  %v3148_v14 = vld [vmem:[#allocation27_spill] sm:$0xff] }
 0x4dc   :  { %v2681_v2 = vadd.f32 %v914_v42, %v2297_v56  ;;  %v915_v50 = vmul.f32 %v896_v44, %v2532_v59  ;;  %v3127_v56 = vld [vmem:[#allocation37_spill] sm:$0xff]  ;;  %v907_v59 = vmul.f32 %v872_v32, %v3128_v7  ;;  %v945_v22 = vmul.f32 %v2686_v15, %v3131_v48  ;;  %v3139_v32 = vld [vmem:[#allocation7_spill] sm:$0xff]  ;;  %v3145_v44 = vld [vmem:[#allocation10_spill] sm:$0xff] }
 0x4dd   :  { %v898_v4 = vpop.f32.mrf.mxu1  ;;  %v906_v58 = vmul.f32 %v868_v31, %v3127_v56  ;;  %v2720_v31 = vadd.f32 %v908_v11, %v3138_v25  ;;  %v944_v33 = vmul.f32 %v2690_v61, %v3139_v32  ;;  %v943_v37 = vmul.f32 %v2699_v60, %v3139_v32  ;;  %v3156_v32 = vld [vmem:[#allocation23_spill] sm:$0xff] }
 0x4de   :  { %v2693_v17 = vadd.f32 %v915_v50, %v3125_v5  ;;  %v916_v10 = vmul.f32 %v898_v4, %v3126_v3  ;;  %v946_v46 = vmul.f32 %v2681_v2, %v3131_v48  ;;  %v2728_v36 = vadd.f32 %v907_v59, %v3141_v30  ;;  %v3146_v50 = vld [vmem:[#allocation32_spill] sm:$0xff]  ;;  %v3149_v3 = vld [vmem:[#allocation15_spill] sm:$0xff] }
 0x4df   :  { %v2734_v40 = vadd.f32 %v906_v58, %v3143_v29  ;;  %v942_v42 = vmul.f32 %v2702_v49, %v3144_v41  ;;  %v901_v28 = vmul.f32 %v854_v26, %v3146_v50  ;;  %v2742_v4 = vadd.f32 %v905_v19, %v3147_v16  ;;  %v3150_v58 = vld [vmem:[#allocation14_spill] sm:$0xff]  ;;  %v3151_v59 = vld [vmem:[#allocation24_spill] sm:$0xff]  ;;  %v3159_v41 = vld [vmem:[#allocation25_spill] sm:$0xff] }
 0x4e0   :  { %v947_v62 = vmul.f32 %v2693_v17, %v3132_v57  ;;  %v2709_v51 = vadd.f32 %v916_v10, %v3133_v9  ;;  %v962_v45 = vadd.f32 %v946_v46, %v3145_v44  ;;  %v961_v11 = vadd.f32 %v945_v22, %v3145_v44  ;;  %v3152_v46 = vld [vmem:[#allocation28_spill] sm:$0xff] }
 0x4e1   :  { %v2748_v5 = vadd.f32 %v904_v24, %v3148_v14  ;;  %v940_v10 = vmul.f32 %v2720_v31, %v3149_v3  ;;  %v960_v7 = vadd.f32 %v944_v33, %v3150_v58  ;;  %v2754_v12 = vadd.f32 %v903_v35, %v3151_v59 }
 0x4e2   :  { %v948_v34 = vmul.f32 %v2709_v51, %v3132_v57  ;;  %v963_v39 = vadd.f32 %v947_v62, %v3142_v38  ;;  %v939_v26 = vmul.f32 %v2728_v36, %v3149_v3  ;;  %v959_v55 = vadd.f32 %v943_v37, %v3150_v58  ;;  %v3153_v62 = vld [vmem:[#allocation19_spill] sm:$0xff] }
 0x4e3   :  { %v2760_v57 = vadd.f32 %v902_v6, %v3152_v46  ;;  %v938_v9 = vmul.f32 %v2734_v40, %v3153_v62  ;;  %v978_v52 = vmax.f32 %v962_v45, 0.0  ;;  %v958_v19 = vadd.f32 %v942_v42, %v3154_v13  ;;  %v3161_v3 = vld [vmem:[#allocation31_spill] sm:$0xff] }
 0x4e4   :  { %v964_v43 = vadd.f32 %v948_v34, %v3142_v38  ;;  %v979_v48 = vmax.f32 %v963_v39, 0.0  ;;  %v2766_v22 = vadd.f32 %v901_v28, %v3155_v20  ;;  %v937_v23 = vmul.f32 %v2742_v4, %v3153_v62  ;;  %v3157_v34 = vld [vmem:[#allocation22_spill] sm:$0xff]  ;;  %v73_v46 = vld [vmem:[%s3014_s4 + $0x8] sm:$0xff]  ;;  %v74_v62 = vld [vmem:[%s3014_s4 + $0x10] sm:$0xff] }
 0x4e5   :  { %v957_v24 = vadd.f32 %v941_v18, %v3154_v13  ;;  %v977_v25 = vmax.f32 %v961_v11, 0.0  ;;  %v936_v6 = vmul.f32 %v2748_v5, %v3156_v32  ;;  %v976_v33 = vmax.f32 %v960_v7, 0.0  ;;  %v3158_v38 = vld [vmem:[#allocation26_spill] sm:$0xff]  ;;  %v77_v13 = vld [vmem:[%s3014_s4 + $0x28] sm:$0xff]  ;;  %v79_v20 = vld [vmem:[%s3014_s4 + $0x38] sm:$0xff] }
 0x4e6   :  { %v980_v56 = vmax.f32 %v964_v43, 0.0  ;;  %v956_v27 = vadd.f32 %v940_v10, %v3157_v34  ;;  %v935_v35 = vmul.f32 %v2754_v12, %v3156_v32  ;;  %v955_v30 = vadd.f32 %v939_v26, %v3157_v34  ;;  %v3160_v28 = vld [vmem:[#allocation30_spill] sm:$0xff] }
 0x4e7   :  { %v975_v37 = vmax.f32 %v959_v55, 0.0  ;;  %v934_v39 = vmul.f32 %v2760_v57, %v3158_v38  ;;  %v974_v29 = vmax.f32 %v958_v19, 0.0  ;;  %v954_v42 = vadd.f32 %v938_v9, %v3159_v41  ;;  %v75_v9 = vld [vmem:[%s3014_s4 + $0x18] sm:$0xff]  ;;  %v78_v19 = vld [vmem:[%s3014_s4 + $0x30] sm:$0xff] }
 0x4e8   :  { %1021 = vmatprep.subr.mxu0 %v980_v56  ;;  %v933_v43 = vmul.f32 %v2766_v22, %v3158_v38  ;;  %v953_v44 = vadd.f32 %v937_v23, %v3159_v41  ;;  %v973_v45 = vmax.f32 %v957_v24, 0.0  ;;  %v972_v50 = vmax.f32 %v956_v27, 0.0 }
 0x4e9   :  { %1022 = vmatpush1.msra.mxu0 %v979_v48  ;;  %v952_v16 = vadd.f32 %v936_v6, %v3160_v28  ;;  %v951_v18 = vadd.f32 %v935_v35, %v3160_v28  ;;  %v971_v11 = vmax.f32 %v955_v30, 0.0  ;;  %v970_v14 = vmax.f32 %v954_v42, 0.0  ;;  %v72_v48 = vld [vmem:[%s3014_s4] sm:$0xff] }
 0x4ea   :  { %1023 = vmatprep.subr.mxu0 %v978_v52  ;;  %v950_v10 = vadd.f32 %v934_v39, %v3161_v3  ;;  %v949_v56 = vadd.f32 %v933_v43, %v3161_v3  ;;  %v969_v58 = vmax.f32 %v953_v44, 0.0  ;;  %v76_v52 = vld [vmem:[%s3014_s4 + $0x20] sm:$0xff] }
 0x4eb   :  { %1024 = vmatpush1.msra.mxu0 %v977_v25  ;;  %v968_v7 = vmax.f32 %v952_v16, 0.0  ;;  %v967_v59 = vmax.f32 %v951_v18, 0.0 }
 0x4ec   :  { %1025 = vmatprep.subr.mxu0 %v976_v33  ;;  %v966_v26 = vmax.f32 %v950_v10, 0.0  ;;  %v965_v55 = vmax.f32 %v949_v56, 0.0 }
 0x4ed   :  { %1026 = vmatpush1.msra.mxu0 %v975_v37 }
 0x4ee   :  { %1027 = vmatprep.subr.mxu0 %v974_v29 }
 0x4ef   :  { %1028 = vmatpush1.msra.mxu0 %v973_v45 }
 0x4f0   :  { %1029 = vmatprep.subr.mxu0 %v972_v50 }
 0x4f1   :  { %1030 = vmatpush1.msra.mxu0 %v971_v11 }
 0x4f2   :  { %1031 = vmatprep.subr.mxu0 %v970_v14 }
 0x4f3   :  { %1032 = vmatpush1.msra.mxu0 %v969_v58 }
 0x4f4   :  { %1033 = vmatprep.subr.mxu0 %v968_v7 }
 0x4f5   :  { %1034 = vmatpush1.msra.mxu0 %v967_v59 }
 0x4f6   :  { %1035 = vmatprep.subr.mxu0 %v966_v26 }
 0x4f7   :  { %1036 = vmatpush1.msra.mxu0 %v965_v55 }
 0x4f8   :  { %1676 = vmatmul.mubr.msk.f32.vlgmr.msra.gmra.mxu0 %vm250_vm0, %v72_v48  ;;  %1893 = vmatprep.subr.mxu0 %v3108_v53 }
 0x4f9   :  { %1075 = vmatprep.mubr.f32.mxu0 %v3108_v53 }
 0x4fc   :  { %1677 = vmatmul.mubr.msk.f32.gmra.mxu0 %vm250_vm0, %v73_v46 }
 0x4fd   :  { %1081 = vmatprep.mubr.f32.mxu0 %v3108_v53 }
 0x500   :  { %1678 = vmatmul.mubr.msk.f32.gmra.mxu0 %vm250_vm0, %v74_v62 }
 0x501   :  { %1087 = vmatprep.mubr.f32.mxu0 %v3108_v53 }
 0x504   :  { %1679 = vmatmul.mubr.msk.f32.gmra.mxu0 %vm250_vm0, %v75_v9 }
 0x505   :  { %1093 = vmatprep.mubr.f32.mxu0 %v3108_v53 }
 0x508   :  { %1680 = vmatmul.mubr.msk.f32.gmra.mxu0 %vm250_vm0, %v76_v52 }
 0x509   :  { %1099 = vmatprep.mubr.f32.mxu0 %v3108_v53 }
 0x50c   :  { %1681 = vmatmul.mubr.msk.f32.gmra.mxu0 %vm250_vm0, %v77_v13 }
 0x50d   :  { %1105 = vmatprep.mubr.f32.mxu0 %v3108_v53 }
 0x510   :  { %1682 = vmatmul.mubr.msk.f32.gmra.mxu0 %vm250_vm0, %v78_v19 }
 0x511   :  { %1111 = vmatprep.mubr.f32.mxu0 %v3108_v53 }
 0x514   :  { %1683 = vmatmul.mubr.msk.f32.gmra.mxu0 %vm250_vm0, %v79_v20 }
 0x515   :  { %1909 = vmatprep.mubr.msk.f32.mxu0 %vm1999_vm1, %v3108_v53 }
 0x5b8   :  { %v2829_v23 = vpop.f32.mrf.mxu0 }
 0x5ba   :  { %v2831_v24 = vpop.f32.mrf.mxu0 }
 0x5bb   :  { %1182 = vmatprep.mubr.f32.mxu1 %v2831_v24 }
 0x5bc   :  { %v2834_v25 = vpop.f32.mrf.mxu0  ;;  %1183 = vmatmul.mubr.f32.vlgmr.msra.gmra.mxu1 %v2829_v23 }
 0x5be   :  { %v2837_v32 = vpop.f32.mrf.mxu0 }
 0x5bf   :  { %1187 = vmatprep.mubr.f32.mxu1 %v2837_v32 }
 0x5c0   :  { %v2840_v6 = vpop.f32.mrf.mxu0  ;;  %1188 = vmatmul.mubr.f32.gmra.mxu1 %v2834_v25 }
 0x5c2   :  { %v2843_v33 = vpop.f32.mrf.mxu0 }
 0x5c3   :  { %1192 = vmatprep.mubr.f32.mxu1 %v2843_v33 }
 0x5c4   :  { %v2846_v34 = vpop.f32.mrf.mxu0  ;;  %1193 = vmatmul.mubr.f32.gmra.mxu1 %v2840_v6 }
 0x5c6   :  { %v2849_v27 = vpop.f32.mrf.mxu0 }
 0x5c7   :  { %1197 = vmatprep.mubr.f32.mxu1 %v2849_v27 }
 0x5c8   :  { %v2852_v35 = vpop.f32.mrf.mxu0  ;;  %1198 = vmatmul.mubr.f32.gmra.mxu1 %v2846_v34 }
 0x5ca   :  { %v2855_v30 = vpop.f32.mrf.mxu0 }
 0x5cb   :  { %1202 = vmatprep.mubr.f32.mxu1 %v2855_v30 }
 0x5cc   :  { %v2858_v37 = vpop.f32.mrf.mxu0  ;;  %1203 = vmatmul.mubr.f32.gmra.mxu1 %v2852_v35 }
 0x5ce   :  { %v2861_v38 = vpop.f32.mrf.mxu0 }
 0x5cf   :  { %1207 = vmatprep.mubr.f32.mxu1 %v2861_v38 }
 0x5d0   :  { %v2864_v39 = vpop.f32.mrf.mxu0  ;;  %1208 = vmatmul.mubr.f32.gmra.mxu1 %v2858_v37 }
 0x5d2   :  { %v2867_v29 = vpop.f32.mrf.mxu0 }
 0x5d3   :  { %1212 = vmatprep.mubr.f32.mxu1 %v2867_v29 }
 0x5d4   :  { %v2870_v41 = vpop.f32.mrf.mxu0  ;;  %1213 = vmatmul.mubr.f32.gmra.mxu1 %v2864_v39 }
 0x5d6   :  { %v2873_v42 = vpop.f32.mrf.mxu0 }
 0x5d7   :  { %1217 = vmatprep.mubr.f32.mxu1 %v2873_v42 }
 0x5d8   :  { %1218 = vmatmul.mubr.f32.gmra.mxu1 %v2870_v41 }
 0x5d9   :  { %1917 = vmatprep.mubr.msk.f32.mxu1 %vm567_vm2, %v2572_v0 }
 0x67c   :  { %v1818_v43 = vpop.f32.mrf.mxu1 }
 0x67e   :  { %v1819_v44 = vpop.f32.mrf.mxu1 }
 0x67f   :  { %v1820_v13 = vadd.f32 %v1819_v44, %v1818_v43  ;;  %v3164_v43 = vld [vmem:[#allocation41_spill] sm:$0xff]  ;;  %v3165_v44 = vld [vmem:[#allocation42_spill] sm:$0xff] }
 0x680   :  { %v1821_v45 = vpop.f32.mrf.mxu1 }
 0x682   :  { %v1822_v50 = vpop.f32.mrf.mxu1 }
 0x683   :  { %v1823_v52 = vadd.f32 %v1822_v50, %v1821_v45 }
 0x684   :  { %v1824_v28 = vpop.f32.mrf.mxu1 }
 0x686   :  { %v1825_v16 = vpop.f32.mrf.mxu1 }
 0x687   :  { %v1826_v9 = vadd.f32 %v1825_v16, %v1824_v28 }
 0x688   :  { %v1827_v18 = vpop.f32.mrf.mxu1 }
 0x68a   :  { %v1828_v11 = vpop.f32.mrf.mxu1 }
 0x68b   :  { %v1829_v62 = vadd.f32 %v1828_v11, %v1827_v18 }
 0x68c   :  { %v1830_v14 = vpop.f32.mrf.mxu1 }
 0x68e   :  { %v1831_v3 = vpop.f32.mrf.mxu1 }
 0x68f   :  { %v1832_v46 = vadd.f32 %v1831_v3, %v1830_v14 }
 0x690   :  { %v1833_v10 = vpop.f32.mrf.mxu1 }
 0x692   :  { %v1834_v56 = vpop.f32.mrf.mxu1 }
 0x693   :  { %v1835_v0 = vadd.f32 %v1834_v56, %v1833_v10 }
 0x694   :  { %v1836_v58 = vpop.f32.mrf.mxu1 }
 0x696   :  { %v1837_v7 = vpop.f32.mrf.mxu1 }
 0x697   :  { %v1838_v48 = vadd.f32 %v1837_v7, %v1836_v58 }
 0x698   :  { %v1839_v59 = vpop.f32.mrf.mxu1 }
 0x69a   :  { %v1840_v26 = vpop.f32.mrf.mxu1 }
 0x69b   :  { %v1841_v55 = vadd.f32 %v1840_v26, %v1839_v59 }
 0x69d   :  { %1894 = vmatpush3.msra.mxu0 %v1841_v55 }
 0x69e   :  { %1895 = vmatprep.subr.mxu0 %v3108_v53 }
 0x69f   :  { %1896 = vmatpush3.msra.mxu0 %v1838_v48 }
 0x6a0   :  { %1897 = vmatprep.subr.mxu0 %v3108_v53 }
 0x6a1   :  { %1898 = vmatpush3.msra.mxu0 %v1835_v0 }
 0x6a2   :  { %1899 = vmatprep.subr.mxu0 %v3108_v53 }
 0x6a3   :  { %1900 = vmatpush3.msra.mxu0 %v1832_v46 }
 0x6a4   :  { %1901 = vmatprep.subr.mxu0 %v3108_v53 }
 0x6a5   :  { %1902 = vmatpush3.msra.mxu0 %v1829_v62 }
 0x6a6   :  { %1903 = vmatprep.subr.mxu0 %v3108_v53 }
 0x6a7   :  { %1904 = vmatpush3.msra.mxu0 %v1826_v9 }
 0x6a8   :  { %1905 = vmatprep.subr.mxu0 %v3108_v53 }
 0x6a9   :  { %1906 = vmatpush3.msra.mxu0 %v1823_v52 }
 0x6aa   :  { %1907 = vmatprep.subr.mxu0 %v3108_v53 }
 0x6ab   :  { %1908 = vmatpush3.msra.mxu0 %v1820_v13 }
 0x6ac   :  { %1910 = vmatmul.mubr.msk.f32.vlgmr.msra.gmra.mxu0 %vm250_vm0, %v2551_v54  ;;  %v3162_v54 = vld [vmem:[#allocation45_spill] sm:$0xff] }
 0x6ad   :  { %1914 = vmatprep.mubr.msk.f32.mxu0 %vm567_vm2, %v2559_v47  ;;  %v3163_v47 = vld [vmem:[#allocation44_spill] sm:$0xff] }
 0x76c   :  { %v1289_v19 = vpop.f32.mrf.mxu0 }
 0x76d   :  { %v1293_v20 = vmax.f32 %v1289_v19, 0.0 }
 0x76e   :  { %v1911_v28 = vpop.f32.mrf.mxu0 }
 0x76f   :  { %1912 = vmatprep.subr.msk.mxu0 %vm592_vm3, %v1293_v20  ;;  %1926 = vmatprep.subr.msk.mxu1 %vm592_vm3, %v1293_v20 }
 0x770   :  { %1913 = vmatpush3.msk.msra.mxu0 %vm592_vm3, %v1293_v20  ;;  %1927 = vmatpush3.msk.msra.mxu1 %vm592_vm3, %v1293_v20 }
 0x771   :  { %1915 = vmatmul.mubr.msk.f32.vlgmr.msra.gmra.mxu0 %vm567_vm2, %v2566_v63  ;;  %1918 = vmatmul.mubr.msk.f32.vlgmr.msra.gmra.mxu1 %vm567_vm2, %v2582_v1  ;;  %v3166_v63 = vld [vmem:[#allocation43_spill] sm:$0xff] }
 0x772   :  { %1920 = vmatprep.mubr.msk.f32.mxu1 %vm567_vm2, %v2587_v8  ;;  %1702 = vmatprep.subr.msk.mxu0 %vm783_vm4, %v3162_v54 }
 0x773   :  { %1703 = vmatpush1.msk.msra.mxu0 %vm783_vm4, %v3163_v47  ;;  %1538 = vmatprep.mubr.f32.mxu0 %v3108_v53 }
 0x775   :  { %1921 = vmatmul.mubr.msk.f32.gmra.mxu1 %vm567_vm2, %v3164_v43 }
 0x776   :  { %1923 = vmatprep.mubr.msk.f32.mxu1 %vm567_vm2, %v3165_v44 }
 0x779   :  { %1924 = vmatmul.mubr.msk.f32.gmra.mxu1 %vm567_vm2, %v3166_v63 }
 0x831   :  { %v1916_v1 = vpop.f32.mrf.mxu0  ;;  %v1919_v45 = vpop.f32.mrf.mxu1 }
 0x832   :  { %v1695_v8 = vmul.f32 -1.442695, %v1916_v1  ;;  %v1697_v3 = vmul.f32 -1.442695, %v1919_v45 }
 0x833   :  { %v1363_v50 = vpop.f32.mrf.mxu0  ;;  %v1373_v16 = vpop.f32.mrf.mxu1 }
 0x834   :  { %v1694_v18 = vmul.f32 -1.442695, %v1363_v50  ;;  %1965 = vpow2.f32 %v1695_v8  ;;  %v1696_v11 = vmul.f32 -1.442695, %v1373_v16 }
 0x835   :  { %v1922_v14 = vpop.f32.mrf.mxu1 }
 0x836   :  { %1967 = vpow2.f32 %v1694_v18  ;;  %v1699_v7 = vmul.f32 -1.442695, %v1922_v14 }
 0x837   :  { %1969 = vpow2.f32 %v1696_v11  ;;  %v1383_v10 = vpop.f32.mrf.mxu1 }
 0x838   :  { %1971 = vpow2.f32 %v1697_v3  ;;  %v1698_v56 = vmul.f32 -1.442695, %v1383_v10 }
 0x839   :  { %v1925_v58 = vpop.f32.mrf.mxu1 }
 0x83a   :  { %1973 = vpow2.f32 %v1698_v56  ;;  %v1701_v9 = vmul.f32 -1.442695, %v1925_v58 }
 0x83b   :  { %v1393_v26 = vpop.f32.mrf.mxu1  ;;  %1975 = vpow2.f32 %v1699_v7 }
 0x83c   :  { %v1700_v0 = vmul.f32 -1.442695, %v1393_v26 }
 0x841   :  { %v1966_v59 = vpop.eup %1965 }
 0x842   :  { %v1427_v46 = vadd.f32 1.0, %v1966_v59 }
 0x843   :  { %v1968_v55 = vpop.eup %1967 }
 0x844   :  { %v1426_v48 = vadd.f32 1.0, %v1968_v55  ;;  %v1970_v62 = vpop.eup %1969 }
 0x845   :  { %v1428_v52 = vadd.f32 1.0, %v1970_v62  ;;  %v1972_v13 = vpop.eup %1971 }
 0x846   :  { %1977 = vrcp.f32 %v1426_v48  ;;  %v1429_v19 = vadd.f32 1.0, %v1972_v13 }
 0x847   :  { %1979 = vpow2.f32 %v1700_v0  ;;  %v1974_v20 = vpop.eup %1973 }
 0x848   :  { %1981 = vrcp.f32 %v1427_v46  ;;  %v1976_v28 = vpop.eup %1975  ;;  %v1430_v54 = vadd.f32 1.0, %v1974_v20 }
 0x849   :  { %1983 = vpow2.f32 %v1701_v9  ;;  %v1431_v44 = vadd.f32 1.0, %v1976_v28 }
 0x84a   :  { %1985 = vrcp.f32 %v1428_v52 }
 0x84b   :  { %1987 = vrcp.f32 %v1429_v19 }
 0x84c   :  { %1989 = vrcp.f32 %v1430_v54 }
 0x84d   :  { %1991 = vrcp.f32 %v1431_v44 }
 0x853   :  { %v1978_v47 = vpop.eup %1977 }
 0x854   :  { %1704 = vmatmul.mubr.msk.f32.vlgmr.msra.gmra.mxu0 %vm758_vm5, %v1978_v47  ;;  %v1980_v43 = vpop.eup %1979 }
 0x855   :  { %1544 = vmatprep.mubr.f32.mxu0 %v3108_v53  ;;  %v1982_v63 = vpop.eup %1981  ;;  %v1432_v45 = vadd.f32 1.0, %v1980_v43 }
 0x856   :  { %v1984_v1 = vpop.eup %1983 }
 0x857   :  { %v1986_v8 = vpop.eup %1985  ;;  %v1433_v50 = vadd.f32 1.0, %v1984_v1  ;;  %1993 = vrcp.f32 %v1432_v45 }
 0x858   :  { %1705 = vmatmul.mubr.msk.f32.gmra.mxu0 %vm758_vm5, %v1982_v63  ;;  %v1988_v16 = vpop.eup %1987 }
 0x859   :  { %1550 = vmatprep.mubr.f32.mxu0 %v3108_v53  ;;  %1995 = vrcp.f32 %v1433_v50  ;;  %v1990_v18 = vpop.eup %1989 }
 0x85a   :  { %v1992_v11 = vpop.eup %1991 }
 0x85c   :  { %1706 = vmatmul.mubr.msk.f32.gmra.mxu0 %vm758_vm5, %v1986_v8 }
 0x85d   :  { %1556 = vmatprep.mubr.f32.mxu0 %v3108_v53 }
 0x860   :  { %1707 = vmatmul.mubr.msk.f32.gmra.mxu0 %vm758_vm5, %v1988_v16 }
 0x861   :  { %1562 = vmatprep.mubr.f32.mxu0 %v3108_v53 }
 0x864   :  { %1708 = vmatmul.mubr.msk.f32.gmra.mxu0 %vm758_vm5, %v1990_v18  ;;  %v1994_v14 = vpop.eup %1993 }
 0x865   :  { %1568 = vmatprep.mubr.f32.mxu0 %v3108_v53 }
 0x866   :  { %v1996_v3 = vpop.eup %1995 }
 0x868   :  { %1709 = vmatmul.mubr.msk.f32.gmra.mxu0 %vm758_vm5, %v1992_v11 }
 0x869   :  { %1574 = vmatprep.mubr.f32.mxu0 %v3108_v53 }
 0x86c   :  { %1710 = vmatmul.mubr.msk.f32.gmra.mxu0 %vm758_vm5, %v1994_v14 }
 0x86d   :  { %1580 = vmatprep.mubr.f32.mxu0 %v3108_v53 }
 0x870   :  { %1711 = vmatmul.mubr.msk.f32.gmra.mxu0 %vm758_vm5, %v1996_v3 }
 0x914   :  { %v1540_v10 = vpop.f32.mrf.mxu0 }
 0x915   :  { %v1587_v56 = vmul.f32 %v1540_v10, %v2829_v23 }
 0x916   :  { %v1542_v58 = vpop.f32.mrf.mxu0 }
 0x917   :  { %v1603_v7 = vadd.f32 %v1587_v56, %v2766_v22  ;;  %v1588_v59 = vmul.f32 %v1542_v58, %v2831_v24 }
 0x918   :  { %v1546_v26 = vpop.f32.mrf.mxu0 }
 0x919   :  { %1619 = vst [vmem:[%s3015_s9] sm:$0xff] %v1603_v7  ;;  %v1604_v55 = vadd.f32 %v1588_v59, %v2760_v57  ;;  %v1589_v53 = vmul.f32 %v1546_v26, %v2834_v25 }
 0x91a   :  { %v1548_v48 = vpop.f32.mrf.mxu0 }
 0x91b   :  { %1620 = vst [vmem:[%s3015_s9 + $0x8] sm:$0xff] %v1604_v55  ;;  %v1605_v23 = vadd.f32 %v1589_v53, %v2754_v12  ;;  %v1590_v22 = vmul.f32 %v1548_v48, %v2837_v32 }
 0x91c   :  { %v1552_v0 = vpop.f32.mrf.mxu0 }
 0x91d   :  { %1621 = vst [vmem:[%s3015_s9 + $0x10] sm:$0xff] %v1605_v23  ;;  %v1606_v24 = vadd.f32 %v1590_v22, %v2748_v5  ;;  %v1591_v57 = vmul.f32 %v1552_v0, %v2840_v6 }
 0x91e   :  { %v1554_v46 = vpop.f32.mrf.mxu0 }
 0x91f   :  { %1622 = vst [vmem:[%s3015_s9 + $0x18] sm:$0xff] %v1606_v24  ;;  %v1607_v25 = vadd.f32 %v1591_v57, %v2742_v4  ;;  %v1592_v12 = vmul.f32 %v1554_v46, %v2843_v33 }
 0x920   :  { %v1558_v62 = vpop.f32.mrf.mxu0 }
 0x921   :  { %1623 = vst [vmem:[%s3015_s9 + $0x20] sm:$0xff] %v1607_v25  ;;  %v1608_v32 = vadd.f32 %v1592_v12, %v2734_v40  ;;  %v1593_v5 = vmul.f32 %v1558_v62, %v2846_v34 }
 0x922   :  { %v1560_v9 = vpop.f32.mrf.mxu0 }
 0x923   :  { %1624 = vst [vmem:[%s3015_s9 + $0x28] sm:$0xff] %v1608_v32  ;;  %v1609_v6 = vadd.f32 %v1593_v5, %v2728_v36  ;;  %v1594_v4 = vmul.f32 %v1560_v9, %v2849_v27 }
 0x924   :  { %v1564_v52 = vpop.f32.mrf.mxu0 }
 0x925   :  { %1625 = vst [vmem:[%s3015_s9 + $0x30] sm:$0xff] %v1609_v6  ;;  %v1610_v33 = vadd.f32 %v1594_v4, %v2720_v31  ;;  %v1595_v40 = vmul.f32 %v1564_v52, %v2852_v35 }
 0x926   :  { %v1566_v13 = vpop.f32.mrf.mxu0 }
 0x927   :  { %1626 = vst [vmem:[%s3015_s9 + $0x38] sm:$0xff] %v1610_v33  ;;  %v1611_v34 = vadd.f32 %v1595_v40, %v2714_v21  ;;  %v1596_v36 = vmul.f32 %v1566_v13, %v2855_v30 }
 0x928   :  { %v1570_v19 = vpop.f32.mrf.mxu0 }
 0x929   :  { %1627 = vst [vmem:[%s3015_s9 + $0x40] sm:$0xff] %v1611_v34  ;;  %v1612_v27 = vadd.f32 %v1596_v36, %v2702_v49  ;;  %v1597_v31 = vmul.f32 %v1570_v19, %v2858_v37 }
 0x92a   :  { %v1572_v20 = vpop.f32.mrf.mxu0 }
 0x92b   :  { %1628 = vst [vmem:[%s3015_s9 + $0x48] sm:$0xff] %v1612_v27  ;;  %v1613_v35 = vadd.f32 %v1597_v31, %v2699_v60  ;;  %v1598_v21 = vmul.f32 %v1572_v20, %v2861_v38 }
 0x92c   :  { %v1576_v28 = vpop.f32.mrf.mxu0 }
 0x92d   :  { %1629 = vst [vmem:[%s3015_s9 + $0x50] sm:$0xff] %v1613_v35  ;;  %v1614_v30 = vadd.f32 %v1598_v21, %v2690_v61  ;;  %v1599_v49 = vmul.f32 %v1576_v28, %v2864_v39 }
 0x92e   :  { %v1578_v54 = vpop.f32.mrf.mxu0 }
 0x92f   :  { %1630 = vst [vmem:[%s3015_s9 + $0x58] sm:$0xff] %v1614_v30  ;;  %v1615_v37 = vadd.f32 %v1599_v49, %v2686_v15  ;;  %v1600_v60 = vmul.f32 %v1578_v54, %v2867_v29 }
 0x930   :  { %v1582_v47 = vpop.f32.mrf.mxu0 }
 0x931   :  { %1631 = vst [vmem:[%s3015_s9 + $0x60] sm:$0xff] %v1615_v37  ;;  %v1616_v38 = vadd.f32 %v1600_v60, %v2681_v2  ;;  %v1601_v61 = vmul.f32 %v1582_v47, %v2870_v41 }
 0x932   :  { %v1584_v43 = vpop.f32.mrf.mxu0 }
 0x933   :  { %1632 = vst [vmem:[%s3015_s9 + $0x68] sm:$0xff] %v1616_v38  ;;  %v1617_v39 = vadd.f32 %v1601_v61, %v2693_v17  ;;  %v1602_v15 = vmul.f32 %v1584_v43, %v2873_v42 }
 0x935   :  { %1633 = vst [vmem:[%s3015_s9 + $0x70] sm:$0xff] %v1617_v39  ;;  %v1618_v29 = vadd.f32 %v1602_v15, %v2709_v51 }
 0x937   :  { %1634 = vst [vmem:[%s3015_s9 + $0x78] sm:$0xff] %v1618_v29 }

</bundles_post_ra>
